<compile_context>
chip_gen: v5e
topology: v5e:2x2
jax: 0.10.0
libtpu: 0.0.40
codegen_flags: <defaults>
</compile_context>

<pallas_src>
import jax
import jax.numpy as jnp
import numpy as np
from jax import lax
from jax.experimental import pallas as pl
from jax.experimental.pallas import tpu as pltpu  # noqa: F401  (TPU backend)


def _action_spotter_kernel(xf_ref, clusters_ref, bn_scale_ref, bn_bias_ref,
                           c2t_ref, w_ref, mask_ref, sel_ref, fc_b_ref,
                           out_ref):
    BN, D = xf_ref.shape          # (B*N, D)
    K = clusters_ref.shape[1]
    B, C = out_ref.shape
    N = BN // B

    xf = xf_ref[...]                                               # (B*N, D) bf16

    # ---- soft assignment for ALL batches in one MXU matmul ----------------
    assign = jnp.dot(xf, clusters_ref[...],
                     preferred_element_type=jnp.float32)           # (B*N, K) f32
    # Eval-mode BatchNorm1d folded into per-cluster scale / bias.
    assign = assign * bn_scale_ref[...] + bn_bias_ref[...]
    # Softmax over clusters (lane axis), EUP reciprocal for the denominator.
    assign = assign - jnp.max(assign, axis=-1, keepdims=True)
    e = jnp.exp(assign)
    assign = e * pl.reciprocal(jnp.sum(e, axis=-1, keepdims=True), approx=True)
    assign_bf = assign.astype(jnp.bfloat16)                        # (B*N, K)

    # ---- per-batch residual aggregation (inherently a batched matmul) -----
    c2t = c2t_ref[...]                                             # (K, D) f32
    ones_n = jnp.ones((N, 1), dtype=jnp.bfloat16)
    vlads = []
    for b in range(B):                       # B tiny & static -> unrolled
        ab = assign_bf[b * N:(b + 1) * N, :]                       # (N, K)
        xb = xf[b * N:(b + 1) * N, :]                              # (N, D)
        # vlad_b[k, d] = sum_n assign[n, k] * x[n, d]     [MXU, bf16 -> f32]
        vlad_b = lax.dot_general(ab, xb, (((0,), (0,)), ((), ())),
                                 preferred_element_type=jnp.float32)   # (K, D)
        # a_sum as a (K, 1) column (avoids a lane->sublane transpose).
        a_sum_b = lax.dot_general(ab, ones_n, (((0,), (0,)), ((), ())),
                                  preferred_element_type=jnp.float32)  # (K, 1)
        vlads.append(vlad_b - a_sum_b * c2t)
    vlad = jnp.concatenate(vlads, axis=0)                          # (B*K, D) f32

    # ---- intra-cluster L2 normalization over D (all B*K rows at once) -----
    ssq = jnp.sum(vlad * vlad, axis=-1, keepdims=True)             # (B*K, 1)
    vlad = vlad * lax.rsqrt(jnp.maximum(ssq, 1e-24))

    # ---- per-batch global L2 norm of the flattened (K*D) descriptor -------
    rsq = jnp.sum(vlad * vlad, axis=-1, keepdims=True)             # (B*K, 1)
    inv_g = jnp.concatenate(
        [lax.rsqrt(jnp.maximum(
            jnp.sum(rsq[b * K:(b + 1) * K, :], axis=0, keepdims=True), 1e-24))
         for b in range(B)], axis=0)                               # (B, 1)

    # ---- fc: ONE (B*K, D) @ (D, K*C) MXU matmul ---------------------------
    # p[b*K + k, k'*C + c] = sum_d vlad[b, k, d] * fc_w[c, d*K + k']
    p = jnp.dot(vlad.astype(jnp.bfloat16), w_ref[...],
                preferred_element_type=jnp.float32)                # (B*K, K*C)
    # Block-diagonal selection (k == k') + fold the cluster axis away.
    mask = mask_ref[...]                                           # (K, K*C) 0/1
    q = jnp.concatenate(
        [jnp.sum(p[b * K:(b + 1) * K, :] * mask, axis=0, keepdims=True)
         for b in range(B)], axis=0)                               # (B, K*C)
    # Sum the K per-cluster contributions of each class: tiny matmul with a
    # stacked-identity selection matrix.
    logits = jnp.dot(q, sel_ref[...],
                     preferred_element_type=jnp.float32)           # (B, C)
    logits = logits * inv_g + fc_b_ref[...]

    # Sigmoid (EUP exp + approx reciprocal), single lane-dense store.
    out_ref[...] = pl.reciprocal(1.0 + jnp.exp(-logits), approx=True)


def action_spotter_netvlad(x, params):
    """x: (B, N, D) float32  ->  (B, num_classes + 1) float32."""
    B, N, D = x.shape
    clusters = params["clusters"]                 # (D, K)
    K = clusters.shape[1]
    C = params["fc_b"].shape[0]
    KC = K * C

    # MXU inputs in bf16 (f32 accumulation inside the kernel).
    xf = x.reshape(B * N, D).astype(jnp.bfloat16)                  # (B*N, D)
    clusters_bf = clusters.astype(jnp.bfloat16)                    # (D, K)
    c2t = params["clusters2"][0].T.astype(jnp.float32)             # (K, D)

    eps = 1e-5
    inv_std = 1.0 / jnp.sqrt(params["bn_var"] + eps)
    bn_scale = (params["bn_gamma"] * inv_std)[None, :]                        # (1, K)
    bn_bias = (params["bn_beta"]
               - params["bn_mean"] * params["bn_gamma"] * inv_std)[None, :]   # (1, K)

    # fc weight (C, D*K) -> (D, K*C) bf16 with the lane axis dense (K*C):
    #   w[d, k*C + c] == fc_w[c, d*K + k]   (matches PyTorch's d*K+k flatten).
    w = jnp.transpose(params["fc_w"].reshape(C, D, K), (1, 2, 0)).reshape(D, KC)
    w = w.astype(jnp.bfloat16)

    # Block-diagonal selection helpers (tiny constants).
    kid = jnp.repeat(jnp.arange(K), C)                                        # (K*C,)
    mask = (jnp.arange(K)[:, None] == kid[None, :]).astype(jnp.float32)       # (K, K*C)
    sel = jnp.tile(jnp.eye(C, dtype=jnp.float32), (K, 1))                     # (K*C, C)
    fc_b = params["fc_b"][None, :].astype(jnp.float32)                        # (1, C)

    def full(shape):
        return pl.BlockSpec(shape, lambda i, s=shape: (0,) * len(s))

    return pl.pallas_call(
        _action_spotter_kernel,
        out_shape=jax.ShapeDtypeStruct((B, C), jnp.float32),
        grid=(1,),
        in_specs=[full(xf.shape), full(clusters_bf.shape), full(bn_scale.shape),
                  full(bn_bias.shape), full(c2t.shape), full(w.shape),
                  full(mask.shape), full(sel.shape), full(fc_b.shape)],
        out_specs=full((B, C)),
    )(xf, clusters_bf, bn_scale, bn_bias, c2t, w, mask, sel, fc_b)


def reference_forward(x, params):
    """Pure-JAX mirror of the PyTorch forward (NetVLAD pool, eval mode)."""
    B, N, D = x.shape
    clusters = params["clusters"]
    K = clusters.shape[1]
    eps = 1e-5
    xf = x.reshape(B * N, D)
    assign = xf @ clusters
    inv_std = 1.0 / jnp.sqrt(params["bn_var"] + eps)
    assign = (assign - params["bn_mean"]) * inv_std * params["bn_gamma"] + params["bn_beta"]
    assign = jax.nn.softmax(assign, axis=1)
    assign = assign.reshape(B, N, K)
    a_sum = jnp.sum(assign, axis=1, keepdims=True)                 # (B, 1, K)
    a = a_sum * params["clusters2"]                                # (B, D, K)
    vlad = jnp.swapaxes(jnp.matmul(jnp.swapaxes(assign, 1, 2), x), 1, 2)  # (B, D, K)
    vlad = vlad - a
    vlad = vlad / jnp.maximum(
        jnp.sqrt(jnp.sum(vlad * vlad, axis=1, keepdims=True)), 1e-12)
    vlad = vlad.reshape(B, D * K)
    vlad = vlad / jnp.maximum(
        jnp.sqrt(jnp.sum(vlad * vlad, axis=1, keepdims=True)), 1e-12)
    logits = vlad @ params["fc_w"].T + params["fc_b"]
    return jax.nn.sigmoid(logits)


if __name__ == "__main__":
    # Small but module-consistent shapes: feature size 512 (no
    # feature_extractor branch), 16 frames, vocab_size=16, num_classes=17.
    B, N, D, K, num_classes = 2, 16, 512, 16, 17
    C = num_classes + 1

    key = jax.random.PRNGKey(0)
    ks = jax.random.split(key, 5)
    fc_bound = 1.0 / float(np.sqrt(D * K))
    params = {
        "clusters": jax.random.normal(ks[0], (D, K), jnp.float32) / jnp.sqrt(float(D)),
        "clusters2": jax.random.normal(ks[1], (1, D, K), jnp.float32) / jnp.sqrt(float(D)),
        "bn_gamma": jnp.ones((K,), jnp.float32),
        "bn_beta": jnp.zeros((K,), jnp.float32),
        "bn_mean": jnp.zeros((K,), jnp.float32),
        "bn_var": jnp.ones((K,), jnp.float32),
        "fc_w": jax.random.uniform(ks[2], (C, D * K), jnp.float32, -fc_bound, fc_bound),
        "fc_b": jax.random.uniform(ks[3], (C,), jnp.float32, -fc_bound, fc_bound),
    }
    x = jax.random.normal(ks[4], (B, N, D), jnp.float32)

    out = jax.block_until_ready(action_spotter_netvlad(x, params))
    ref = jax.block_until_ready(reference_forward(x, params))

    assert out.shape == (B, C)
    np.testing.assert_allclose(np.asarray(out), np.asarray(ref), rtol=2e-2, atol=2e-2)
    print("KERNEL_OK")
</pallas_src>

<mosaic_0001>
module attributes {stable_mosaic.version = 11 : i64} {
  func.func @_action_spotter_kernel(%arg0: i32, %arg1: memref<32x512xbf16, #tpu.memory_space<vmem>>, %arg2: memref<512x16xbf16, #tpu.memory_space<vmem>>, %arg3: memref<1x16xf32, #tpu.memory_space<vmem>>, %arg4: memref<1x16xf32, #tpu.memory_space<vmem>>, %arg5: memref<16x512xf32, #tpu.memory_space<vmem>>, %arg6: memref<512x288xbf16, #tpu.memory_space<vmem>>, %arg7: memref<16x288xf32, #tpu.memory_space<vmem>>, %arg8: memref<288x18xf32, #tpu.memory_space<vmem>>, %arg9: memref<1x18xf32, #tpu.memory_space<vmem>>, %arg10: memref<2x18xf32, #tpu.memory_space<vmem>>) attributes {dimension_semantics = [#tpu.dimension_semantics<arbitrary>], iteration_bounds = array<i64: 1>, scalar_prefetch = 0 : i64, scratch_operands = 0 : i64, tpu.core_type = #tpu.core_type<tc>, window_params = [{pipeline_mode = #tpu.pipeline_mode<synchronous>, transform_indices = @transform_0, window_bounds = array<i64: 32, 512>}, {pipeline_mode = #tpu.pipeline_mode<synchronous>, transform_indices = @transform_1, window_bounds = array<i64: 512, 16>}, {pipeline_mode = #tpu.pipeline_mode<synchronous>, transform_indices = @transform_2, window_bounds = array<i64: 1, 16>}, {pipeline_mode = #tpu.pipeline_mode<synchronous>, transform_indices = @transform_3, window_bounds = array<i64: 1, 16>}, {pipeline_mode = #tpu.pipeline_mode<synchronous>, transform_indices = @transform_4, window_bounds = array<i64: 16, 512>}, {pipeline_mode = #tpu.pipeline_mode<synchronous>, transform_indices = @transform_5, window_bounds = array<i64: 512, 288>}, {pipeline_mode = #tpu.pipeline_mode<synchronous>, transform_indices = @transform_6, window_bounds = array<i64: 16, 288>}, {pipeline_mode = #tpu.pipeline_mode<synchronous>, transform_indices = @transform_7, window_bounds = array<i64: 288, 18>}, {pipeline_mode = #tpu.pipeline_mode<synchronous>, transform_indices = @transform_8, window_bounds = array<i64: 1, 18>}, {pipeline_mode = #tpu.pipeline_mode<synchronous>, transform_indices = @transform_9, window_bounds = array<i64: 2, 18>}]} {
    %c0 = arith.constant 0 : index
    %c0_0 = arith.constant 0 : index
    %0 = vector.load %arg1[%c0, %c0_0] : memref<32x512xbf16, #tpu.memory_space<vmem>>, vector<32x512xbf16>
    %c0_1 = arith.constant 0 : index
    %c0_2 = arith.constant 0 : index
    %1 = vector.load %arg2[%c0_1, %c0_2] : memref<512x16xbf16, #tpu.memory_space<vmem>>, vector<512x16xbf16>
    %cst = arith.constant dense<0.000000e+00> : vector<32x16xf32>
    %2 = tpu.matmul %0, %1, %cst {dimension_numbers = #tpu.dot_dimension_numbers<[1], [0], [0], [1], [0, 0, 1, 1], [], []>} : vector<32x512xbf16>, vector<512x16xbf16>, vector<32x16xf32> -> vector<32x16xf32>
    %c0_3 = arith.constant 0 : index
    %c0_4 = arith.constant 0 : index
    %3 = vector.load %arg3[%c0_3, %c0_4] : memref<1x16xf32, #tpu.memory_space<vmem>>, vector<1x16xf32>
    %4 = vector.broadcast %3 : vector<1x16xf32> to vector<32x16xf32>
    %5 = arith.mulf %2, %4 : vector<32x16xf32>
    %c0_5 = arith.constant 0 : index
    %c0_6 = arith.constant 0 : index
    %6 = vector.load %arg4[%c0_5, %c0_6] : memref<1x16xf32, #tpu.memory_space<vmem>>, vector<1x16xf32>
    %7 = vector.broadcast %6 : vector<1x16xf32> to vector<32x16xf32>
    %8 = arith.addf %5, %7 : vector<32x16xf32>
    %cst_7 = arith.constant dense<0xFF800000> : vector<32xf32>
    %9 = vector.multi_reduction <maximumf>, %8, %cst_7 [1] : vector<32x16xf32> to vector<32xf32>
    %10 = vector.shape_cast %9 : vector<32xf32> to vector<32x1xf32>
    %11 = vector.broadcast %10 : vector<32x1xf32> to vector<32x16xf32>
    %12 = arith.subf %8, %11 : vector<32x16xf32>
    %13 = math.exp %12 : vector<32x16xf32>
    %cst_8 = arith.constant dense<0.000000e+00> : vector<32xf32>
    %14 = vector.multi_reduction <add>, %13, %cst_8 [1] : vector<32x16xf32> to vector<32xf32>
    %15 = vector.shape_cast %14 : vector<32xf32> to vector<32x1xf32>
    %16 = tpu.reciprocal %15 {approx = true} : vector<32x1xf32> -> vector<32x1xf32>
    %17 = vector.broadcast %16 : vector<32x1xf32> to vector<32x16xf32>
    %18 = arith.mulf %13, %17 : vector<32x16xf32>
    %19 = arith.truncf %18 : vector<32x16xf32> to vector<32x16xbf16>
    %c0_9 = arith.constant 0 : index
    %c0_10 = arith.constant 0 : index
    %20 = vector.load %arg5[%c0_9, %c0_10] : memref<16x512xf32, #tpu.memory_space<vmem>>, vector<16x512xf32>
    %cst_11 = arith.constant 1.000000e+00 : bf16
    %21 = vector.broadcast %cst_11 : bf16 to vector<16x1xbf16>
    %22 = vector.extract_strided_slice %19 {offsets = [0, 0], sizes = [16, 16], strides = [1, 1]} : vector<32x16xbf16> to vector<16x16xbf16>
    %23 = vector.extract_strided_slice %0 {offsets = [0, 0], sizes = [16, 512], strides = [1, 1]} : vector<32x512xbf16> to vector<16x512xbf16>
    %cst_12 = arith.constant dense<0.000000e+00> : vector<16x512xf32>
    %24 = tpu.matmul %22, %23, %cst_12 {dimension_numbers = #tpu.dot_dimension_numbers<[0], [0], [1], [1], [0, 1, 1, 1], [], []>} : vector<16x16xbf16>, vector<16x512xbf16>, vector<16x512xf32> -> vector<16x512xf32>
    %cst_13 = arith.constant dense<0.000000e+00> : vector<16x1xf32>
    %25 = tpu.matmul %22, %21, %cst_13 {dimension_numbers = #tpu.dot_dimension_numbers<[0], [0], [1], [1], [0, 1, 1, 1], [], []>} : vector<16x16xbf16>, vector<16x1xbf16>, vector<16x1xf32> -> vector<16x1xf32>
    %26 = vector.broadcast %25 : vector<16x1xf32> to vector<16x512xf32>
    %27 = arith.mulf %26, %20 : vector<16x512xf32>
    %28 = arith.subf %24, %27 : vector<16x512xf32>
    %29 = vector.extract_strided_slice %19 {offsets = [16, 0], sizes = [16, 16], strides = [1, 1]} : vector<32x16xbf16> to vector<16x16xbf16>
    %30 = vector.extract_strided_slice %0 {offsets = [16, 0], sizes = [16, 512], strides = [1, 1]} : vector<32x512xbf16> to vector<16x512xbf16>
    %cst_14 = arith.constant dense<0.000000e+00> : vector<16x512xf32>
    %31 = tpu.matmul %29, %30, %cst_14 {dimension_numbers = #tpu.dot_dimension_numbers<[0], [0], [1], [1], [0, 1, 1, 1], [], []>} : vector<16x16xbf16>, vector<16x512xbf16>, vector<16x512xf32> -> vector<16x512xf32>
    %cst_15 = arith.constant dense<0.000000e+00> : vector<16x1xf32>
    %32 = tpu.matmul %29, %21, %cst_15 {dimension_numbers = #tpu.dot_dimension_numbers<[0], [0], [1], [1], [0, 1, 1, 1], [], []>} : vector<16x16xbf16>, vector<16x1xbf16>, vector<16x1xf32> -> vector<16x1xf32>
    %33 = vector.broadcast %32 : vector<16x1xf32> to vector<16x512xf32>
    %34 = arith.mulf %33, %20 : vector<16x512xf32>
    %35 = arith.subf %31, %34 : vector<16x512xf32>
    %36 = tpu.concatenate %28, %35 in 0 : vector<16x512xf32>, vector<16x512xf32> -> vector<32x512xf32>
    %37 = arith.mulf %36, %36 : vector<32x512xf32>
    %cst_16 = arith.constant dense<0.000000e+00> : vector<32xf32>
    %38 = vector.multi_reduction <add>, %37, %cst_16 [1] : vector<32x512xf32> to vector<32xf32>
    %39 = vector.shape_cast %38 : vector<32xf32> to vector<32x1xf32>
    %cst_17 = arith.constant 1.000000e-24 : f32
    %40 = vector.broadcast %cst_17 : f32 to vector<32x1xf32>
    %41 = arith.maximumf %39, %40 : vector<32x1xf32>
    %42 = math.rsqrt %41 : vector<32x1xf32>
    %43 = vector.broadcast %42 : vector<32x1xf32> to vector<32x512xf32>
    %44 = arith.mulf %36, %43 : vector<32x512xf32>
    %45 = arith.mulf %44, %44 : vector<32x512xf32>
    %cst_18 = arith.constant dense<0.000000e+00> : vector<32xf32>
    %46 = vector.multi_reduction <add>, %45, %cst_18 [1] : vector<32x512xf32> to vector<32xf32>
    %47 = vector.shape_cast %46 : vector<32xf32> to vector<32x1xf32>
    %48 = vector.extract_strided_slice %47 {offsets = [0, 0], sizes = [16, 1], strides = [1, 1]} : vector<32x1xf32> to vector<16x1xf32>
    %cst_19 = arith.constant dense<0.000000e+00> : vector<1xf32>
    %49 = vector.multi_reduction <add>, %48, %cst_19 [0] : vector<16x1xf32> to vector<1xf32>
    %50 = vector.shape_cast %49 : vector<1xf32> to vector<1x1xf32>
    %cst_20 = arith.constant 1.000000e-24 : f32
    %51 = vector.broadcast %cst_20 : f32 to vector<1x1xf32>
    %52 = arith.maximumf %50, %51 : vector<1x1xf32>
    %53 = math.rsqrt %52 : vector<1x1xf32>
    %54 = vector.extract_strided_slice %47 {offsets = [16, 0], sizes = [16, 1], strides = [1, 1]} : vector<32x1xf32> to vector<16x1xf32>
    %cst_21 = arith.constant dense<0.000000e+00> : vector<1xf32>
    %55 = vector.multi_reduction <add>, %54, %cst_21 [0] : vector<16x1xf32> to vector<1xf32>
    %56 = vector.shape_cast %55 : vector<1xf32> to vector<1x1xf32>
    %cst_22 = arith.constant 1.000000e-24 : f32
    %57 = vector.broadcast %cst_22 : f32 to vector<1x1xf32>
    %58 = arith.maximumf %56, %57 : vector<1x1xf32>
    %59 = math.rsqrt %58 : vector<1x1xf32>
    %60 = tpu.concatenate %53, %59 in 0 : vector<1x1xf32>, vector<1x1xf32> -> vector<2x1xf32>
    %61 = arith.truncf %44 : vector<32x512xf32> to vector<32x512xbf16>
    %c0_23 = arith.constant 0 : index
    %c0_24 = arith.constant 0 : index
    %62 = vector.load %arg6[%c0_23, %c0_24] : memref<512x288xbf16, #tpu.memory_space<vmem>>, vector<512x288xbf16>
    %cst_25 = arith.constant dense<0.000000e+00> : vector<32x288xf32>
    %63 = tpu.matmul %61, %62, %cst_25 {dimension_numbers = #tpu.dot_dimension_numbers<[1], [0], [0], [1], [0, 0, 1, 1], [], []>} : vector<32x512xbf16>, vector<512x288xbf16>, vector<32x288xf32> -> vector<32x288xf32>
    %c0_26 = arith.constant 0 : index
    %c0_27 = arith.constant 0 : index
    %64 = vector.load %arg7[%c0_26, %c0_27] : memref<16x288xf32, #tpu.memory_space<vmem>>, vector<16x288xf32>
    %65 = vector.extract_strided_slice %63 {offsets = [0, 0], sizes = [16, 288], strides = [1, 1]} : vector<32x288xf32> to vector<16x288xf32>
    %66 = arith.mulf %65, %64 : vector<16x288xf32>
    %cst_28 = arith.constant dense<0.000000e+00> : vector<288xf32>
    %67 = vector.multi_reduction <add>, %66, %cst_28 [0] : vector<16x288xf32> to vector<288xf32>
    %68 = vector.shape_cast %67 : vector<288xf32> to vector<1x288xf32>
    %69 = vector.extract_strided_slice %63 {offsets = [16, 0], sizes = [16, 288], strides = [1, 1]} : vector<32x288xf32> to vector<16x288xf32>
    %70 = arith.mulf %69, %64 : vector<16x288xf32>
    %cst_29 = arith.constant dense<0.000000e+00> : vector<288xf32>
    %71 = vector.multi_reduction <add>, %70, %cst_29 [0] : vector<16x288xf32> to vector<288xf32>
    %72 = vector.shape_cast %71 : vector<288xf32> to vector<1x288xf32>
    %73 = tpu.concatenate %68, %72 in 0 : vector<1x288xf32>, vector<1x288xf32> -> vector<2x288xf32>
    %c0_30 = arith.constant 0 : index
    %c0_31 = arith.constant 0 : index
    %74 = vector.load %arg8[%c0_30, %c0_31] : memref<288x18xf32, #tpu.memory_space<vmem>>, vector<288x18xf32>
    %cst_32 = arith.constant dense<0.000000e+00> : vector<2x18xf32>
    %75 = tpu.matmul %73, %74, %cst_32 {dimension_numbers = #tpu.dot_dimension_numbers<[1], [0], [0], [1], [0, 0, 1, 1], [], []>} : vector<2x288xf32>, vector<288x18xf32>, vector<2x18xf32> -> vector<2x18xf32>
    %76 = vector.broadcast %60 : vector<2x1xf32> to vector<2x18xf32>
    %77 = arith.mulf %75, %76 : vector<2x18xf32>
    %c0_33 = arith.constant 0 : index
    %c0_34 = arith.constant 0 : index
    %78 = vector.load %arg9[%c0_33, %c0_34] : memref<1x18xf32, #tpu.memory_space<vmem>>, vector<1x18xf32>
    %79 = vector.broadcast %78 : vector<1x18xf32> to vector<2x18xf32>
    %80 = arith.addf %77, %79 : vector<2x18xf32>
    %cst_35 = arith.constant 0.000000e+00 : f32
    %81 = vector.broadcast %cst_35 : f32 to vector<2x18xf32>
    %82 = arith.subf %81, %80 : vector<2x18xf32>
    %83 = math.exp %82 : vector<2x18xf32>
    %cst_36 = arith.constant 1.000000e+00 : f32
    %84 = vector.broadcast %cst_36 : f32 to vector<2x18xf32>
    %85 = arith.addf %84, %83 : vector<2x18xf32>
    %86 = tpu.reciprocal %85 {approx = true} : vector<2x18xf32> -> vector<2x18xf32>
    %c0_37 = arith.constant 0 : index
    %c0_38 = arith.constant 0 : index
    %87 = vector.load %arg10[%c0_37, %c0_38] : memref<2x18xf32, #tpu.memory_space<vmem>>, vector<2x18xf32>
    tpu.vector_store %arg10[%c0_37, %c0_38], %86 {strides = array<i32>} : memref<2x18xf32, #tpu.memory_space<vmem>>, vector<2x18xf32>,
    return
  }
  func.func @transform_0(%arg0: i32) -> (i32, i32) {
    %c0_i32 = arith.constant 0 : i32
    %c0_i32_0 = arith.constant 0 : i32
    %c0_i32_1 = arith.constant 0 : i32
    return %c0_i32, %c0_i32_0 : i32, i32
  }
  func.func @transform_1(%arg0: i32) -> (i32, i32) {
    %c0_i32 = arith.constant 0 : i32
    %c0_i32_0 = arith.constant 0 : i32
    %c0_i32_1 = arith.constant 0 : i32
    return %c0_i32, %c0_i32_0 : i32, i32
  }
  func.func @transform_2(%arg0: i32) -> (i32, i32) {
    %c0_i32 = arith.constant 0 : i32
    %c0_i32_0 = arith.constant 0 : i32
    %c0_i32_1 = arith.constant 0 : i32
    return %c0_i32, %c0_i32_0 : i32, i32
  }
  func.func @transform_3(%arg0: i32) -> (i32, i32) {
    %c0_i32 = arith.constant 0 : i32
    %c0_i32_0 = arith.constant 0 : i32
    %c0_i32_1 = arith.constant 0 : i32
    return %c0_i32, %c0_i32_0 : i32, i32
  }
  func.func @transform_4(%arg0: i32) -> (i32, i32) {
    %c0_i32 = arith.constant 0 : i32
    %c0_i32_0 = arith.constant 0 : i32
    %c0_i32_1 = arith.constant 0 : i32
    return %c0_i32, %c0_i32_0 : i32, i32
  }
  func.func @transform_5(%arg0: i32) -> (i32, i32) {
    %c0_i32 = arith.constant 0 : i32
    %c0_i32_0 = arith.constant 0 : i32
    %c0_i32_1 = arith.constant 0 : i32
    return %c0_i32, %c0_i32_0 : i32, i32
  }
  func.func @transform_6(%arg0: i32) -> (i32, i32) {
    %c0_i32 = arith.constant 0 : i32
    %c0_i32_0 = arith.constant 0 : i32
    %c0_i32_1 = arith.constant 0 : i32
    return %c0_i32, %c0_i32_0 : i32, i32
  }
  func.func @transform_7(%arg0: i32) -> (i32, i32) {
    %c0_i32 = arith.constant 0 : i32
    %c0_i32_0 = arith.constant 0 : i32
    %c0_i32_1 = arith.constant 0 : i32
    return %c0_i32, %c0_i32_0 : i32, i32
  }
  func.func @transform_8(%arg0: i32) -> (i32, i32) {
    %c0_i32 = arith.constant 0 : i32
    %c0_i32_0 = arith.constant 0 : i32
    %c0_i32_1 = arith.constant 0 : i32
    return %c0_i32, %c0_i32_0 : i32, i32
  }
  func.func @transform_9(%arg0: i32) -> (i32, i32) {
    %c0_i32 = arith.constant 0 : i32
    %c0_i32_0 = arith.constant 0 : i32
    %c0_i32_1 = arith.constant 0 : i32
    return %c0_i32, %c0_i32_0 : i32, i32
  }
}

</mosaic_0001>

<bundles_post_ra>
// kernel: tpu_custom_call.1
= control target key start
LH: loop header
LB: loop body
LE: loop exit
PB: predicated region body
PF: predicated region fallthrough
CT: control target
= control target key end

     0   :  { %s3897_s0 = inlined_call_operand.vmem [shape: bf16[32,512], index: 0, kind: input, shape index: {}]   ;;  %s3898_s1 = inlined_call_operand.vmem [shape: bf16[512,16], index: 1, kind: input, shape index: {}]   ;;  %s3899_s2 = inlined_call_operand.vmem [shape: f32[1,16], index: 2, kind: input, shape index: {}]   ;;  %s3900_s3 = inlined_call_operand.vmem [shape: f32[1,16], index: 3, kind: input, shape index: {}]   ;;  %s3901_s4 = inlined_call_operand.vmem [shape: f32[16,512], index: 4, kind: input, shape index: {}]   ;;  %s3902_s5 = inlined_call_operand.vmem [shape: bf16[512,288], index: 5, kind: input, shape index: {}]   ;;  %s3903_s6 = inlined_call_operand.vmem [shape: f32[16,288], index: 6, kind: input, shape index: {}]   ;;  %s3904_s7 = inlined_call_operand.vmem [shape: f32[288,18], index: 7, kind: input, shape index: {}]   ;;  %s3905_s8 = inlined_call_operand.vmem [shape: f32[1,18], index: 8, kind: input, shape index: {}]   ;;  %s3906_s9 = inlined_call_operand.hbm [shape: f32[2,18], index: 9, kind: output, shape index: {}]  }
   0x1   :  { %v2547_v0 = vld [vmem:[%s3898_s1 + $0x38] sm:$0xff]  ;;  %v2546_v4 = vld [vmem:[%s3898_s1 + $0x30] sm:$0xff]  ;;  %v2545_v8 = vld [vmem:[%s3898_s1 + $0x28] sm:$0xff] }
   0x2   :  { %v2555_v1 = vld [vmem:[%s3898_s1 + $0x78] sm:$0xff]  ;;  %339 = vmatpush.bf16.msra.mxu0 %v2547_v0  ;;  %v2554_v5 = vld [vmem:[%s3898_s1 + $0x70] sm:$0xff]  ;;  %v2553_v9 = vld [vmem:[%s3898_s1 + $0x68] sm:$0xff] }
   0x3   :  { %v2563_v2 = vld [vmem:[%s3898_s1 + $0xb8] sm:$0xff]  ;;  %358 = vmatpush.bf16.msra.mxu1 %v2555_v1  ;;  %v2562_v6 = vld [vmem:[%s3898_s1 + $0xb0] sm:$0xff]  ;;  %v2561_v10 = vld [vmem:[%s3898_s1 + $0xa8] sm:$0xff] }
   0x4   :  { %v2571_v3 = vld [vmem:[%s3898_s1 + $0xf8] sm:$0xff]  ;;  %377 = vmatpush.bf16.msra.mxu2 %v2563_v2  ;;  %v2570_v7 = vld [vmem:[%s3898_s1 + $0xf0] sm:$0xff]  ;;  %v2569_v11 = vld [vmem:[%s3898_s1 + $0xe8] sm:$0xff] }
   0x5   :  { %396 = vmatpush.bf16.msra.mxu3 %v2571_v3  ;;  %v2544_v12 = vld [vmem:[%s3898_s1 + $0x20] sm:$0xff]  ;;  %v2543_v16 = vld [vmem:[%s3898_s1 + $0x18] sm:$0xff] }
   0x6   :  { %340 = vmatpush.bf16.msra.mxu0 %v2546_v4  ;;  %v2552_v13 = vld [vmem:[%s3898_s1 + $0x60] sm:$0xff]  ;;  %v2551_v17 = vld [vmem:[%s3898_s1 + $0x58] sm:$0xff] }
   0x7   :  { %359 = vmatpush.bf16.msra.mxu1 %v2554_v5  ;;  %v2560_v14 = vld [vmem:[%s3898_s1 + $0xa0] sm:$0xff]  ;;  %v2559_v18 = vld [vmem:[%s3898_s1 + $0x98] sm:$0xff] }
   0x8   :  { %378 = vmatpush.bf16.msra.mxu2 %v2562_v6  ;;  %v2568_v15 = vld [vmem:[%s3898_s1 + $0xe0] sm:$0xff]  ;;  %v2567_v19 = vld [vmem:[%s3898_s1 + $0xd8] sm:$0xff] }
   0x9   :  { %397 = vmatpush.bf16.msra.mxu3 %v2570_v7 }
   0xa   :  { %341 = vmatpush.bf16.msra.mxu0 %v2545_v8 }
   0xb   :  { %360 = vmatpush.bf16.msra.mxu1 %v2553_v9 }
   0xc   :  { %379 = vmatpush.bf16.msra.mxu2 %v2561_v10 }
   0xd   :  { %398 = vmatpush.bf16.msra.mxu3 %v2569_v11 }
   0xe   :  { %342 = vmatpush.bf16.msra.mxu0 %v2544_v12 }
   0xf   :  { %361 = vmatpush.bf16.msra.mxu1 %v2552_v13 }
  0x10   :  { %380 = vmatpush.bf16.msra.mxu2 %v2560_v14 }
  0x11   :  { %399 = vmatpush.bf16.msra.mxu3 %v2568_v15 }
  0x12   :  { %14 = vsyncpa [#allocation3], 0  ;;  %343 = vmatpush.bf16.msra.mxu0 %v2543_v16  ;;  %v2542_v20 = vld [vmem:[%s3898_s1 + $0x10] sm:$0xff]  ;;  %v2541_v24 = vld [vmem:[%s3898_s1 + $0x8] sm:$0xff]  ;;  %vm431_vm0 = vcmask 130048   ;;  %s2737_s11 = smov [#allocation2]  }
  0x13   :  { %362 = vmatpush.bf16.msra.mxu1 %v2551_v17  ;;  %v2550_v21 = vld [vmem:[%s3898_s1 + $0x50] sm:$0xff]  ;;  %v2549_v25 = vld [vmem:[%s3898_s1 + $0x48] sm:$0xff]  ;;  %v2540_v28 = vld [vmem:[%s3898_s1] sm:$0xff]  ;;  %s1966_s12 = sshll.u32 %s2737_s11, 4  ;;  %s1967_s12 = int_to_ptr.vmem [resolvable:$true] %s1966_s12 }
  0x14   :  { %381 = vmatpush.bf16.msra.mxu2 %v2559_v18  ;;  %v2558_v22 = vld [vmem:[%s3898_s1 + $0x90] sm:$0xff]  ;;  %v2557_v26 = vld [vmem:[%s3898_s1 + $0x88] sm:$0xff]  ;;  %v2548_v29 = vld [vmem:[%s3898_s1 + $0x40] sm:$0xff] }
  0x15   :  { %400 = vmatpush.bf16.msra.mxu3 %v2567_v19  ;;  %v2566_v23 = vld [vmem:[%s3898_s1 + $0xd0] sm:$0xff]  ;;  %v2565_v27 = vld [vmem:[%s3898_s1 + $0xc8] sm:$0xff]  ;;  %v2556_v30 = vld [vmem:[%s3898_s1 + $0x80] sm:$0xff] }
  0x16   :  { %344 = vmatpush.bf16.msra.mxu0 %v2542_v20  ;;  %v2564_v31 = vld [vmem:[%s3898_s1 + $0xc0] sm:$0xff]  ;;  %v2534_v33 = vld [vmem:[%s3897_s0 + $0xc] sm:$0xf0]  ;;  %v1981_v35 = vld [vmem:[%s3897_s0 + $0x10] sm:$0xf0] }
  0x17   :  { %363 = vmatpush.bf16.msra.mxu1 %v2550_v21  ;;  %v1979_v32 = vld [vmem:[%s3897_s0] sm:$0xf]  ;;  %v2532_v34 = vld [vmem:[%s3897_s0 + $0x4] sm:$0xf]  ;;  %v1987_v36 = vld [vmem:[%s3897_s0 + $0x8] sm:$0xf] }
  0x18   :  { %382 = vmatpush.bf16.msra.mxu2 %v2558_v22  ;;  %v2535_v37 = vld [vmem:[%s3897_s0 + $0x14] sm:$0xf0]  ;;  %v2533_v38 = vld [vmem:[%s3897_s0 + $0xc] sm:$0xf]  ;;  %v1989_v39 = vld [vmem:[%s3897_s0 + $0x18] sm:$0xf0]  ;;  %v1980_v40 = vor.u32 %v2534_v33, %v1979_v32  ;;  %v1984_v41 = vor.u32 %v2532_v34, %v1981_v35 }
  0x19   :  { %401 = vmatpush.bf16.msra.mxu3 %v2566_v23  ;;  %v1988_v42 = vor.u32 %v2535_v37, %v1987_v36  ;;  %v1992_v43 = vor.u32 %v2533_v38, %v1989_v39  ;;  %v1995_v44 = vld [vmem:[%s3897_s0 + $0x20] sm:$0xf]  ;;  %v2538_v45 = vld [vmem:[%s3897_s0 + $0x2c] sm:$0xf0]  ;;  %v2536_v46 = vld [vmem:[%s3897_s0 + $0x24] sm:$0xf] }
  0x1a   :  { %345 = vmatpush.bf16.msra.mxu0 %v2541_v24  ;;  %v1997_v47 = vld [vmem:[%s3897_s0 + $0x30] sm:$0xf0]  ;;  %v2003_v48 = vld [vmem:[%s3897_s0 + $0x28] sm:$0xf]  ;;  %v2539_v49 = vld [vmem:[%s3897_s0 + $0x34] sm:$0xf0]  ;;  %v1996_v50 = vor.u32 %v2538_v45, %v1995_v44 }
  0x1b   :  { %364 = vmatpush.bf16.msra.mxu1 %v2549_v25  ;;  %v2000_v51 = vor.u32 %v2536_v46, %v1997_v47  ;;  %v2004_v52 = vor.u32 %v2539_v49, %v2003_v48  ;;  %v2537_v53 = vld [vmem:[%s3897_s0 + $0x2c] sm:$0xf]  ;;  %v2005_v54 = vld [vmem:[%s3897_s0 + $0x38] sm:$0xf0]  ;;  %v2674_v62 = vld [vmem:[%s3899_s2] ss:$0 sm:$0xff] }
  0x1c   :  { %383 = vmatpush.bf16.msra.mxu2 %v2557_v26  ;;  %v2932_v55 = vor.u32 %v2537_v53, %v2005_v54  ;;  %v2675_v2 = vld [vmem:[%s3900_s3] ss:$0 sm:$0xff] }
  0x1d   :  { %402 = vmatpush.bf16.msra.mxu3 %v2565_v27 }
  0x1e   :  { %346 = vmatpush.bf16.msra.mxu0 %v2540_v28 }
  0x1f   :  { %365 = vmatpush.bf16.msra.mxu1 %v2548_v29 }
  0x20   :  { %384 = vmatpush.bf16.msra.mxu2 %v2556_v30 }
  0x21   :  { %403 = vmatpush.bf16.msra.mxu3 %v2564_v31  ;;  %347 = vmatmul.bf16.vlgmr.msra.gmra.mxu0 %v1980_v40 }
  0x22   :  { %520 = vmatpush.bf16.msrb.mxu0 %v1980_v40  ;;  %366 = vmatmul.bf16.vlgmr.msra.gmra.mxu1 %v1984_v41 }
  0x23   :  { %534 = vmatpush.bf16.msrb.mxu1 %v1984_v41  ;;  %385 = vmatmul.bf16.vlgmr.msra.gmra.mxu2 %v1988_v42 }
  0x24   :  { %404 = vmatmul.bf16.vlgmr.msra.gmra.mxu3 %v1992_v43  ;;  %548 = vmatpush.bf16.msrb.mxu2 %v1988_v42 }
  0x25   :  { %562 = vmatpush.bf16.msrb.mxu3 %v1992_v43 }
  0x27   :  { %641 = vmatpush.bf16.msra.mxu1 %v1996_v50 }
  0x28   :  { %655 = vmatpush.bf16.msra.mxu2 %v2000_v51 }
  0x29   :  { %669 = vmatpush.bf16.msra.mxu3 %v2004_v52 }
  0x31   :  { %352 = vmatmul.bf16.gmra.mxu0 %v1996_v50 }
  0x32   :  { %371 = vmatmul.bf16.gmra.mxu1 %v2000_v51 }
  0x33   :  { %390 = vmatmul.bf16.gmra.mxu2 %v2004_v52 }
  0x34   :  { %409 = vmatmul.bf16.gmra.mxu3 %v2932_v55 }
  0x9e   :  { %v348_v56 = vpop.f32.mrf.mxu0 }
  0x9f   :  { %v367_v57 = vpop.f32.mrf.mxu1 }
  0xa0   :  { %v368_v58 = vadd.f32 %v367_v57, %v348_v56 }
  0xa6   :  { %v386_v59 = vpop.f32.mrf.mxu2  ;;  %v350_v63 = vpop.f32.mrf.mxu0 }
  0xa7   :  { %v405_v60 = vpop.f32.mrf.mxu3  ;;  %v387_v61 = vadd.f32 %v386_v59, %v368_v58  ;;  %v369_v0 = vpop.f32.mrf.mxu1 }
  0xa8   :  { %v370_v4 = vadd.f32 %v369_v0, %v350_v63 }
  0xa9   :  { %v406_v1 = vadd.f32 %v405_v60, %v387_v61 }
  0xab   :  { %v419_v3 = vmul.f32 %v2674_v62, %v406_v1 }
  0xad   :  { %v427_v5 = vadd.f32 %v2675_v2, %v419_v3 }
  0xae   :  { %v388_v6 = vpop.f32.mrf.mxu2  ;;  %v353_v10 = vpop.f32.mrf.mxu0 }
  0xaf   :  { %v407_v7 = vpop.f32.mrf.mxu3  ;;  %v389_v8 = vadd.f32 %v388_v6, %v370_v4  ;;  %v432_v9 = vsel %vm431_vm0, %v427_v5, -inf  ;;  %v372_v11 = vpop.f32.mrf.mxu1 }
  0xb0   :  { %433 = vmax.xlane.f32.xlu0 %v432_v9  ;;  %v373_v14 = vadd.f32 %v372_v11, %v353_v10 }
  0xb1   :  { %v408_v12 = vadd.f32 %v407_v7, %v389_v8 }
  0xb3   :  { %v420_v13 = vmul.f32 %v2674_v62, %v408_v12 }
  0xb5   :  { %v428_v15 = vadd.f32 %v2675_v2, %v420_v13  ;;  %v2735_v13 = vmov 1065369472  }
  0xb6   :  { %v391_v16 = vpop.f32.mrf.mxu2  ;;  %v355_v21 = vpop.f32.mrf.mxu0  ;;  %576 = vmatpush.bf16.msra.mxu0 %v2735_v13 }
  0xb7   :  { %v410_v17 = vpop.f32.mrf.mxu3  ;;  %v392_v18 = vadd.f32 %v391_v16, %v373_v14  ;;  %v435_v19 = vsel %vm431_vm0, %v428_v15, -inf  ;;  %v374_v22 = vpop.f32.mrf.mxu1  ;;  %v2736_v16 = vmov 0  }
  0xb8   :  { %436 = vmax.xlane.f32.xlu0 %v435_v19  ;;  %v375_v24 = vadd.f32 %v374_v22, %v355_v21  ;;  %2671 = vset.pattern.permute.xlu1 %v2736_v16 }
  0xb9   :  { %v411_v20 = vadd.f32 %v410_v17, %v392_v18 }
  0xbb   :  { %v421_v23 = vmul.f32 %v2674_v62, %v411_v20 }
  0xbd   :  { %v429_v25 = vadd.f32 %v2675_v2, %v421_v23 }
  0xbe   :  { %v393_v26 = vpop.f32.mrf.mxu2 }
  0xbf   :  { %v394_v27 = vadd.f32 %v393_v26, %v375_v24  ;;  %v438_v28 = vsel %vm431_vm0, %v429_v25, -inf  ;;  %v412_v29 = vpop.f32.mrf.mxu3  ;;  %v480_v26 = vld [vmem:[%s3901_s4] sm:$0xff] }
  0xc0   :  { %439 = vmax.xlane.f32.xlu1 %v438_v28  ;;  %v482_v28 = vld [vmem:[%s3901_s4 + $0x10] sm:$0xff] }
  0xc1   :  { %v413_v30 = vadd.f32 %v412_v29, %v394_v27  ;;  %v481_v27 = vld [vmem:[%s3901_s4 + $0x8] sm:$0xff] }
  0xc3   :  { %v422_v31 = vmul.f32 %v2674_v62, %v413_v30  ;;  %v483_v30 = vld [vmem:[%s3901_s4 + $0x18] sm:$0xff] }
  0xc5   :  { %v430_v32 = vadd.f32 %v2675_v2, %v422_v31 }
  0xc7   :  { %v441_v33 = vsel %vm431_vm0, %v430_v32, -inf }
  0xc8   :  { %442 = vmax.xlane.f32.xlu1 %v441_v33 }
 0x123   :  { %v434_v34 = vpop.xlane.xlu0 %433 }
 0x124   :  { %v444_v35 = vsub.f32 %v427_v5, %v434_v34 }
 0x126   :  { %v448_v36 = vmul.f32 1.442695, %v444_v35 }
 0x128   :  { %2677 = vpow2.f32 %v448_v36 }
 0x12b   :  { %v437_v37 = vpop.xlane.xlu0 %436 }
 0x12c   :  { %v445_v38 = vsub.f32 %v428_v15, %v437_v37 }
 0x12e   :  { %v2678_v39 = vpop.eup %2677  ;;  %v450_v40 = vmul.f32 1.442695, %v445_v38 }
 0x12f   :  { %v456_v41 = vsel %vm431_vm0, %v2678_v39, 0.0 }
 0x130   :  { %2679 = vpow2.f32 %v450_v40  ;;  %457 = vadd.xlane.f32.xlu2 %v456_v41  ;;  %v484_v40 = vld [vmem:[%s3901_s4 + $0x20] sm:$0xff] }
 0x133   :  { %v440_v42 = vpop.xlane.xlu1 %439 }
 0x134   :  { %v446_v43 = vsub.f32 %v429_v25, %v440_v42 }
 0x136   :  { %v2680_v44 = vpop.eup %2679  ;;  %v452_v45 = vmul.f32 1.442695, %v446_v43  ;;  %v485_v43 = vld [vmem:[%s3901_s4 + $0x28] sm:$0xff] }
 0x137   :  { %v459_v46 = vsel %vm431_vm0, %v2680_v44, 0.0 }
 0x138   :  { %2681 = vpow2.f32 %v452_v45  ;;  %460 = vadd.xlane.f32.xlu2 %v459_v46  ;;  %v487_v45 = vld [vmem:[%s3901_s4 + $0x38] sm:$0xff] }
 0x13b   :  { %v443_v47 = vpop.xlane.xlu1 %442 }
 0x13c   :  { %v447_v48 = vsub.f32 %v430_v32, %v443_v47 }
 0x13e   :  { %v2682_v49 = vpop.eup %2681  ;;  %v454_v50 = vmul.f32 1.442695, %v447_v48 }
 0x13f   :  { %v462_v51 = vsel %vm431_vm0, %v2682_v49, 0.0 }
 0x140   :  { %2683 = vpow2.f32 %v454_v50  ;;  %463 = vadd.xlane.f32.xlu0 %v462_v51 }
 0x146   :  { %v2684_v52 = vpop.eup %2683 }
 0x147   :  { %v465_v53 = vsel %vm431_vm0, %v2684_v52, 0.0 }
 0x148   :  { %466 = vadd.xlane.f32.xlu1 %v465_v53 }
 0x1a3   :  { %v458_v54 = vpop.xlane.xlu2 %457 }
 0x1a4   :  { %2685 = vrcp.f32 %v458_v54 }
 0x1aa   :  { %v2686_v57 = vpop.eup %2685 }
 0x1ab   :  { %v461_v56 = vpop.xlane.xlu2 %460  ;;  %v472_v58 = vmul.f32 %v2686_v57, %v2678_v39 }
 0x1ac   :  { %2687 = vrcp.f32 %v461_v56 }
 0x1ad   :  { %v476_v62 = vpack.c.bf16 %v472_v58, %v472_v58 }
 0x1af   :  { %v490_v0 = vunpack.c.l.b16 %v476_v62 }
 0x1b2   :  { %v2688_v59 = vpop.eup %2687 }
 0x1b3   :  { %v464_v60 = vpop.xlane.xlu0 %463  ;;  %v473_v61 = vmul.f32 %v2688_v59, %v2680_v44  ;;  %v486_v44 = vld [vmem:[%s3901_s4 + $0x30] sm:$0xff]  ;;  %s1968_s4 = sshll.u32 %s3906_s9, 4  ;;  %s1969_s4 = int_to_ptr.hbm [resolvable:$true] %s1968_s4 }
 0x1b4   :  { %2689 = vrcp.f32 %v464_v60 }
 0x1b5   :  { %v477_v63 = vpack.c.bf16 %v473_v61, %v473_v61 }
 0x1b7   :  { %v491_v1 = vunpack.c.l.b16 %v477_v63 }
 0x1b9   :  { %v492_v2 = vpack.c.b16 %v491_v1, %v490_v0 }
 0x1ba   :  { %v2690_v4 = vpop.eup %2689 }
 0x1bb   :  { %v467_v3 = vpop.xlane.xlu1 %466  ;;  %494 = vxpose.xlu2.c.b16.start.end [1/1] (short) (narrow) %v492_v2, 16  ;;  %v474_v5 = vmul.f32 %v2690_v4, %v2682_v49 }
 0x1bc   :  { %2691 = vrcp.f32 %v467_v3 }
 0x1bd   :  { %v478_v8 = vpack.c.bf16 %v474_v5, %v474_v5 }
 0x1bf   :  { %v611_v10 = vunpack.c.l.b16 %v478_v8 }
 0x1c2   :  { %v2692_v6 = vpop.eup %2691 }
 0x1c3   :  { %v475_v7 = vmul.f32 %v2692_v6, %v2684_v52 }
 0x1c5   :  { %v479_v9 = vpack.c.bf16 %v475_v7, %v475_v7 }
 0x1c7   :  { %v612_v11 = vunpack.c.l.b16 %v479_v9 }
 0x1c9   :  { %v613_v12 = vpack.c.b16 %v612_v11, %v611_v10 }
 0x1cb   :  { %615 = vxpose.xlu0.c.b16.start.end [1/1] (short) (narrow) %v613_v12, 16 }
 0x21d   :  { %2672 = vset.pattern.permute.xlu2 %v2736_v16 }
 0x232   :  { %2673 = vset.pattern.permute.xlu0 %v2736_v16 }
 0x25c   :  { %v502_v14 = vpop.trf.xlu2 }
 0x25d   :  { %2137 = vmatmul.msk.bf16.vlgmr.msrb.gmra.mxu0 %vm431_vm0, %v502_v14  ;;  %2138 = vmatmul.msk.bf16.vlgmr.msrb.gmra.mxu1 %vm431_vm0, %v502_v14 }
 0x25e   :  { %2139 = vmatmul.msk.bf16.vlgmr.msrb.gmra.mxu2 %vm431_vm0, %v502_v14  ;;  %2140 = vmatmul.msk.bf16.vlgmr.msrb.gmra.mxu3 %vm431_vm0, %v502_v14 }
 0x25f   :  { %697 = vmatpush.bf16.msrb.mxu1 %v2735_v13  ;;  %683 = vmatpush.bf16.msrb.mxu0 %v2932_v55 }
 0x26d   :  { %2141 = vmatmul.msk.bf16.vlgmr.msra.gmra.mxu0 %vm431_vm0, %v502_v14 }
 0x277   :  { %v623_v15 = vpop.trf.xlu0 }
 0x278   :  { %2142 = vmatmul.msk.bf16.vlgmr.msra.gmra.mxu1 %vm431_vm0, %v623_v15  ;;  %2143 = vmatmul.msk.bf16.vlgmr.msra.gmra.mxu2 %vm431_vm0, %v623_v15 }
 0x279   :  { %2144 = vmatmul.msk.bf16.vlgmr.msra.gmra.mxu3 %vm431_vm0, %v623_v15 }
 0x27d   :  { %2145 = vmatmul.msk.bf16.vlgmr.msrb.gmra.mxu0 %vm431_vm0, %v623_v15 }
 0x288   :  { %2146 = vmatmul.msk.bf16.vlgmr.msrb.gmra.mxu1 %vm431_vm0, %v623_v15  ;;  %vm898_vm0 = vcmask 1040384  }
 0x2da   :  { %v522_v17 = vpop.f32.mrf.mxu0  ;;  %v536_v55 = vpop.f32.mrf.mxu1 }
 0x2e1   :  { %v550_v29 = vpop.f32.mrf.mxu2  ;;  %v564_v35 = vpop.f32.mrf.mxu3 }
 0x2e2   :  { %v524_v18 = vpop.f32.mrf.mxu0  ;;  %v538_v20 = vpop.f32.mrf.mxu1 }
 0x2e9   :  { %v552_v54 = vpop.f32.mrf.mxu2  ;;  %v566_v61 = vpop.f32.mrf.mxu3 }
 0x2ea   :  { %v578_v19 = vpop.f32.mrf.mxu0 }
 0x2eb   :  { %585 = vperm.xlu1 %2671, %v578_v19  }
 0x2f2   :  { %v580_v21 = vpop.f32.mrf.mxu0 }
 0x2f3   :  { %590 = vperm.xlu1 %2671, %v580_v21  }
 0x2f5   :  { %v2960_v22 = vpop.f32.mrf.mxu1 }
 0x2fb   :  { %v657_v6 = vpop.f32.mrf.mxu2 }
 0x2fc   :  { %v671_v9 = vpop.f32.mrf.mxu3 }
 0x2fd   :  { %v2962_v23 = vpop.f32.mrf.mxu1 }
 0x305   :  { %v699_v24 = vpop.f32.mrf.mxu1 }
 0x306   :  { %706 = vperm.xlu1 %2671, %v699_v24  }
 0x30d   :  { %v701_v25 = vpop.f32.mrf.mxu1 }
 0x30e   :  { %711 = vperm.xlu2 %2672, %v701_v25  }
 0x35d   :  { %v586_v31 = vpop.permute.xlu1 %585 }
 0x35e   :  { %v593_v32 = vmul.f32 %v586_v31, %v480_v26  ;;  %v594_v33 = vmul.f32 %v586_v31, %v481_v27  ;;  %v595_v34 = vmul.f32 %v586_v31, %v482_v28  ;;  %v596_v36 = vmul.f32 %v586_v31, %v483_v30  ;;  %v673_v31 = vpop.f32.mrf.mxu3 }
 0x360   :  { %v2976_v37 = vsub.f32 %v522_v17, %v593_v32  ;;  %v2978_v38 = vsub.f32 %v536_v55, %v594_v33  ;;  %v2980_v39 = vsub.f32 %v550_v29, %v595_v34  ;;  %v2998_v46 = vsub.f32 %v564_v35, %v596_v36  ;;  %v685_v17 = vpop.f32.mrf.mxu0 }
 0x362   :  { %v730_v41 = vmul.f32 %v2976_v37, %v2976_v37  ;;  %v731_v42 = vmul.f32 %v2978_v38, %v2978_v38  ;;  %v732_v49 = vmul.f32 %v2980_v39, %v2980_v39  ;;  %v733_v59 = vmul.f32 %v2998_v46, %v2998_v46 }
 0x364   :  { %v746_v47 = vadd.f32 %v731_v42, %v730_v41 }
 0x365   :  { %v591_v48 = vpop.permute.xlu1 %590 }
 0x366   :  { %v597_v50 = vmul.f32 %v591_v48, %v484_v40  ;;  %v598_v51 = vmul.f32 %v591_v48, %v485_v43  ;;  %v599_v52 = vmul.f32 %v591_v48, %v486_v44  ;;  %v600_v53 = vmul.f32 %v591_v48, %v487_v45  ;;  %v2233_v48 = vld [vmem:[%s3902_s5 + $0xa8] sm:$0xf] }
 0x367   :  { %v747_v56 = vadd.f32 %v746_v47, %v732_v49  ;;  %v2594_v49 = vld [vmem:[%s3902_s5 + $0xb0] sm:$0xf0] }
 0x368   :  { %v3002_v57 = vsub.f32 %v524_v18, %v597_v50  ;;  %v3004_v58 = vsub.f32 %v538_v20, %v598_v51  ;;  %v3008_v60 = vsub.f32 %v552_v54, %v599_v52  ;;  %v3010_v63 = vsub.f32 %v566_v61, %v600_v53  ;;  %v712_v8 = vpop.permute.xlu2 %711  ;;  %v659_v18 = vpop.f32.mrf.mxu2  ;;  %v2329_v50 = vld [vmem:[%s3902_s5 + $0x168] sm:$0xf]  ;;  %v2618_v52 = vld [vmem:[%s3902_s5 + $0x170] sm:$0xf0] }
 0x369   :  { %v748_v62 = vadd.f32 %v747_v56, %v733_v59  ;;  %v718_v10 = vmul.f32 %v712_v8, %v484_v40  ;;  %v719_v11 = vmul.f32 %v712_v8, %v485_v43  ;;  %v720_v25 = vmul.f32 %v712_v8, %v486_v44  ;;  %v687_v41 = vpop.f32.mrf.mxu0  ;;  %v2425_v53 = vld [vmem:[%s3902_s5 + $0x228] sm:$0xf]  ;;  %v2642_v54 = vld [vmem:[%s3902_s5 + $0x230] sm:$0xf0] }
 0x36a   :  { %v734_v0 = vmul.f32 %v3002_v57, %v3002_v57  ;;  %v735_v1 = vmul.f32 %v3004_v58, %v3004_v58  ;;  %v736_v2 = vmul.f32 %v3008_v60, %v3008_v60  ;;  %v737_v4 = vmul.f32 %v3010_v63, %v3010_v63  ;;  %v2521_v61 = vld [vmem:[%s3902_s5 + $0x2e8] sm:$0xf] }
 0x36b   :  { %749 = vadd.xlane.f32.xlu0 %v748_v62  ;;  %v3021_v55 = vsub.f32 %v2962_v23, %v718_v10  ;;  %v3023_v19 = vsub.f32 %v659_v18, %v719_v11  ;;  %v721_v32 = vmul.f32 %v712_v8, %v487_v45  ;;  %v3044_v33 = vsub.f32 %v673_v31, %v720_v25  ;;  %v2666_v62 = vld [vmem:[%s3902_s5 + $0x2f0] sm:$0xf0]  ;;  %v2509_v10 = vld [vmem:[%s3902_s5 + $0x2d0] sm:$0xf]  ;;  %v2663_v11 = vld [vmem:[%s3902_s5 + $0x2d8] sm:$0xf0] }
 0x36c   :  { %v751_v3 = vadd.f32 %v735_v1, %v734_v0  ;;  %v2234_v51 = vor.u32 %v2594_v49, %v2233_v48  ;;  %v2330_v56 = vor.u32 %v2618_v52, %v2329_v50  ;;  %v2426_v59 = vor.u32 %v2642_v54, %v2425_v53  ;;  %v2221_v1 = vld [vmem:[%s3902_s5 + $0x90] sm:$0xf]  ;;  %v2401_v18 = vld [vmem:[%s3902_s5 + $0x1f8] sm:$0xf]  ;;  %v2636_v25 = vld [vmem:[%s3902_s5 + $0x200] sm:$0xf0] }
 0x36d   :  { %v3048_v42 = vsub.f32 %v687_v41, %v721_v32  ;;  %v744_v43 = vmul.f32 %v3044_v33, %v3044_v33  ;;  %v2522_v0 = vor.u32 %v2666_v62, %v2521_v61  ;;  %v2585_v31 = vld [vmem:[%s3902_s5 + $0x68] sm:$0xf0]  ;;  %v2293_v32 = vld [vmem:[%s3902_s5 + $0x120] sm:$0xf]  ;;  %v2185_v48 = vld [vmem:[%s3902_s5 + $0x48] sm:$0xf] }
 0x36e   :  { %v752_v5 = vadd.f32 %v751_v3, %v736_v2  ;;  %1548 = vmatpush.bf16.msrb.mxu2 %v2234_v51  ;;  %1567 = vmatpush.bf16.msrb.mxu3 %v2330_v56  ;;  %v2591_v2 = vld [vmem:[%s3902_s5 + $0x98] sm:$0xf0]  ;;  %v2317_v3 = vld [vmem:[%s3902_s5 + $0x150] sm:$0xf]  ;;  %v2582_v49 = vld [vmem:[%s3902_s5 + $0x50] sm:$0xf0] }
 0x36f   :  { %v745_v47 = vmul.f32 %v3048_v42, %v3048_v42  ;;  %1586 = vmatpush.bf16.msra.mxu0 %v2426_v59  ;;  %1605 = vmatpush.bf16.msra.mxu1 %v2522_v0  ;;  %v2281_v50 = vld [vmem:[%s3902_s5 + $0x108] sm:$0xf]  ;;  %v2186_v51 = vor.u32 %v2582_v49, %v2185_v48  ;;  %v2606_v52 = vld [vmem:[%s3902_s5 + $0x110] sm:$0xf0] }
 0x370   :  { %v753_v7 = vadd.f32 %v752_v5, %v737_v4  ;;  %v2222_v4 = vor.u32 %v2591_v2, %v2221_v1  ;;  %v2615_v5 = vld [vmem:[%s3902_s5 + $0x158] sm:$0xf0]  ;;  %v2377_v53 = vld [vmem:[%s3902_s5 + $0x1c8] sm:$0xf]  ;;  %v2630_v54 = vld [vmem:[%s3902_s5 + $0x1d0] sm:$0xf0]  ;;  %v2282_v56 = vor.u32 %v2606_v52, %v2281_v50 }
 0x371   :  { %v2318_v8 = vor.u32 %v2615_v5, %v2317_v3  ;;  %v2378_v59 = vor.u32 %v2630_v54, %v2377_v53  ;;  %v2473_v61 = vld [vmem:[%s3902_s5 + $0x288] sm:$0xf]  ;;  %v2654_v62 = vld [vmem:[%s3902_s5 + $0x290] sm:$0xf0]  ;;  %v2173_v1 = vld [vmem:[%s3902_s5 + $0x30] sm:$0xf] }
 0x372   :  { %754 = vadd.xlane.f32.xlu1 %v753_v7  ;;  %v2639_v7 = vld [vmem:[%s3902_s5 + $0x218] sm:$0xf0]  ;;  %1549 = vmatpush.bf16.msrb.mxu2 %v2222_v4  ;;  %v2474_v0 = vor.u32 %v2654_v62, %v2473_v61  ;;  %v2269_v3 = vld [vmem:[%s3902_s5 + $0xf0] sm:$0xf]  ;;  %v2593_v54 = vld [vmem:[%s3902_s5 + $0xac] sm:$0xf] }
 0x373   :  { %1568 = vmatpush.bf16.msrb.mxu3 %v2318_v8  ;;  %v2579_v2 = vld [vmem:[%s3902_s5 + $0x38] sm:$0xf0]  ;;  %v2331_v62 = vld [vmem:[%s3902_s5 + $0x174] sm:$0xf0] }
 0x374   :  { %v2174_v4 = vor.u32 %v2579_v2, %v2173_v1  ;;  %v2603_v5 = vld [vmem:[%s3902_s5 + $0xf8] sm:$0xf0] }
 0x375   :  { %v2270_v8 = vor.u32 %v2603_v5, %v2269_v3  ;;  %v2427_v3 = vld [vmem:[%s3902_s5 + $0x234] sm:$0xf0] }
 0x376   :  { %v2523_v5 = vld [vmem:[%s3902_s5 + $0x2f4] sm:$0xf0] }
 0x378   :  { %v707_v12 = vpop.permute.xlu1 %706 }
 0x379   :  { %v714_v13 = vmul.f32 %v707_v12, %v480_v26  ;;  %v715_v14 = vmul.f32 %v707_v12, %v481_v27  ;;  %v716_v15 = vmul.f32 %v707_v12, %v482_v28  ;;  %v717_v16 = vmul.f32 %v707_v12, %v483_v30 }
 0x37a   :  { %v743_v30 = vmul.f32 %v3023_v19, %v3023_v19  ;;  %v2510_v12 = vor.u32 %v2663_v11, %v2509_v10  ;;  %v2461_v10 = vld [vmem:[%s3902_s5 + $0x270] sm:$0xf]  ;;  %v2651_v11 = vld [vmem:[%s3902_s5 + $0x278] sm:$0xf0] }
 0x37b   :  { %v3026_v20 = vsub.f32 %v2960_v22, %v714_v13  ;;  %v3028_v21 = vsub.f32 %v657_v6, %v715_v14  ;;  %v3030_v24 = vsub.f32 %v671_v9, %v716_v15  ;;  %v3032_v29 = vsub.f32 %v685_v17, %v717_v16  ;;  %v2413_v6 = vld [vmem:[%s3902_s5 + $0x210] sm:$0xf]  ;;  %v2209_v13 = vld [vmem:[%s3902_s5 + $0x78] sm:$0xf]  ;;  %v2588_v14 = vld [vmem:[%s3902_s5 + $0x80] sm:$0xf0] }
 0x37c   :  { %v742_v22 = vmul.f32 %v3021_v55, %v3021_v55  ;;  %v2414_v9 = vor.u32 %v2639_v7, %v2413_v6  ;;  %v2305_v15 = vld [vmem:[%s3902_s5 + $0x138] sm:$0xf]  ;;  %1606 = vmatpush.bf16.msra.mxu1 %v2510_v12  ;;  %v2210_v16 = vor.u32 %v2588_v14, %v2209_v13  ;;  %v2612_v17 = vld [vmem:[%s3902_s5 + $0x140] sm:$0xf0]  ;;  %v2365_v6 = vld [vmem:[%s3902_s5 + $0x1b0] sm:$0xf]  ;;  %v2462_v12 = vor.u32 %v2651_v11, %v2461_v10 }
 0x37d   :  { %v738_v26 = vmul.f32 %v3026_v20, %v3026_v20  ;;  %v739_v27 = vmul.f32 %v3028_v21, %v3028_v21  ;;  %v740_v23 = vmul.f32 %v3030_v24, %v3030_v24  ;;  %v741_v34 = vmul.f32 %v3032_v29, %v3032_v29  ;;  %v2627_v7 = vld [vmem:[%s3902_s5 + $0x1b8] sm:$0xf0]  ;;  %v2161_v13 = vld [vmem:[%s3902_s5 + $0x18] sm:$0xf]  ;;  %v2576_v14 = vld [vmem:[%s3902_s5 + $0x20] sm:$0xf0] }
 0x37e   :  { %v761_v40 = vadd.f32 %v743_v30, %v742_v22  ;;  %1587 = vmatpush.bf16.msra.mxu0 %v2414_v9  ;;  %1550 = vmatpush.bf16.msrb.mxu2 %v2210_v16  ;;  %v2197_v30 = vld [vmem:[%s3902_s5 + $0x60] sm:$0xf]  ;;  %v2366_v9 = vor.u32 %v2627_v7, %v2365_v6  ;;  %v2162_v16 = vor.u32 %v2576_v14, %v2161_v13  ;;  %v2614_v13 = vld [vmem:[%s3902_s5 + $0x154] sm:$0xf] }
 0x37f   :  { %v756_v28 = vadd.f32 %v739_v27, %v738_v26  ;;  %v2306_v26 = vor.u32 %v2612_v17, %v2305_v15  ;;  %v2402_v27 = vor.u32 %v2636_v25, %v2401_v18  ;;  %v2257_v15 = vld [vmem:[%s3902_s5 + $0xd8] sm:$0xf]  ;;  %v2600_v17 = vld [vmem:[%s3902_s5 + $0xe0] sm:$0xf0]  ;;  %v2223_v10 = vld [vmem:[%s3902_s5 + $0x9c] sm:$0xf0] }
 0x380   :  { %v762_v44 = vadd.f32 %v761_v40, %v744_v43  ;;  %v2633_v40 = vld [vmem:[%s3902_s5 + $0x1e8] sm:$0xf0]  ;;  %v2353_v18 = vld [vmem:[%s3902_s5 + $0x198] sm:$0xf]  ;;  %v2624_v25 = vld [vmem:[%s3902_s5 + $0x1a0] sm:$0xf0] }
 0x381   :  { %v757_v35 = vadd.f32 %v756_v28, %v740_v23  ;;  %v2497_v23 = vld [vmem:[%s3902_s5 + $0x2b8] sm:$0xf]  ;;  %v2660_v28 = vld [vmem:[%s3902_s5 + $0x2c0] sm:$0xf0]  ;;  %1569 = vmatpush.bf16.msrb.mxu3 %v2306_v26  ;;  %v2258_v26 = vor.u32 %v2600_v17, %v2257_v15  ;;  %v2319_v14 = vld [vmem:[%s3902_s5 + $0x15c] sm:$0xf0] }
 0x382   :  { %v763_v45 = vadd.f32 %v762_v44, %v745_v47  ;;  %v2498_v22 = vor.u32 %v2660_v28, %v2497_v23  ;;  %1588 = vmatpush.bf16.msra.mxu0 %v2402_v27  ;;  %v2485_v44 = vld [vmem:[%s3902_s5 + $0x2a0] sm:$0xf]  ;;  %v2657_v47 = vld [vmem:[%s3902_s5 + $0x2a8] sm:$0xf0]  ;;  %v2354_v27 = vor.u32 %v2624_v25, %v2353_v18  ;;  %v2449_v23 = vld [vmem:[%s3902_s5 + $0x258] sm:$0xf]  ;;  %v2322_v18 = vor.u32 %v2614_v13, %v2319_v14 }
 0x383   :  { %v758_v36 = vadd.f32 %v757_v35, %v741_v34  ;;  %v2198_v34 = vor.u32 %v2585_v31, %v2197_v30  ;;  %v2609_v35 = vld [vmem:[%s3902_s5 + $0x128] sm:$0xf0]  ;;  %v2648_v28 = vld [vmem:[%s3902_s5 + $0x260] sm:$0xf0]  ;;  %v2149_v30 = vld [vmem:[%s3902_s5] sm:$0xf] }
 0x384   :  { %1607 = vmatpush.bf16.msra.mxu1 %v2498_v22  ;;  %v2294_v41 = vor.u32 %v2609_v35, %v2293_v32  ;;  %v2450_v22 = vor.u32 %v2648_v28, %v2449_v23  ;;  %v2573_v31 = vld [vmem:[%s3902_s5 + $0x8] sm:$0xf0]  ;;  %v2245_v32 = vld [vmem:[%s3902_s5 + $0xc0] sm:$0xf]  ;;  %v2638_v15 = vld [vmem:[%s3902_s5 + $0x214] sm:$0xf] }
 0x385   :  { %759 = vadd.xlane.f32.xlu1 %v758_v36  ;;  %v2389_v36 = vld [vmem:[%s3902_s5 + $0x1e0] sm:$0xf]  ;;  %1551 = vmatpush.bf16.msrb.mxu2 %v2198_v34  ;;  %v2150_v34 = vor.u32 %v2573_v31, %v2149_v30  ;;  %v2597_v35 = vld [vmem:[%s3902_s5 + $0xc8] sm:$0xf0] }
 0x386   :  { %v2390_v43 = vor.u32 %v2633_v40, %v2389_v36  ;;  %1570 = vmatpush.bf16.msrb.mxu3 %v2294_v41  ;;  %v2341_v36 = vld [vmem:[%s3902_s5 + $0x180] sm:$0xf]  ;;  %v2621_v40 = vld [vmem:[%s3902_s5 + $0x188] sm:$0xf0]  ;;  %v2246_v41 = vor.u32 %v2597_v35, %v2245_v32  ;;  %v2587_v32 = vld [vmem:[%s3902_s5 + $0x7c] sm:$0xf] }
 0x387   :  { %v2415_v25 = vld [vmem:[%s3902_s5 + $0x21c] sm:$0xf0]  ;;  %v2611_v35 = vld [vmem:[%s3902_s5 + $0x13c] sm:$0xf] }
 0x388   :  { %1589 = vmatpush.bf16.msra.mxu0 %v2390_v43  ;;  %v2342_v43 = vor.u32 %v2621_v40, %v2341_v36  ;;  %v2418_v23 = vor.u32 %v2638_v15, %v2415_v25  ;;  %v2511_v28 = vld [vmem:[%s3902_s5 + $0x2dc] sm:$0xf0]  ;;  %v2307_v40 = vld [vmem:[%s3902_s5 + $0x144] sm:$0xf0] }
 0x389   :  { %1552 = vmatpush.bf16.msrb.mxu2 %v2186_v51 }
 0x38a   :  { %1571 = vmatpush.bf16.msrb.mxu3 %v2282_v56  ;;  %v2235_v56 = vld [vmem:[%s3902_s5 + $0xb4] sm:$0xf0] }
 0x38b   :  { %v2238_v61 = vor.u32 %v2593_v54, %v2235_v56  ;;  %v2584_v56 = vld [vmem:[%s3902_s5 + $0x64] sm:$0xf] }
 0x38c   :  { %1590 = vmatpush.bf16.msra.mxu0 %v2378_v59  ;;  %v2617_v59 = vld [vmem:[%s3902_s5 + $0x16c] sm:$0xf] }
 0x38d   :  { %764 = vadd.xlane.f32.xlu1 %v763_v45  ;;  %v2486_v45 = vor.u32 %v2657_v47, %v2485_v44  ;;  %1553 = vmatpush.bf16.msrb.mxu2 %v2174_v4  ;;  %v2437_v44 = vld [vmem:[%s3902_s5 + $0x240] sm:$0xf]  ;;  %v2645_v47 = vld [vmem:[%s3902_s5 + $0x248] sm:$0xf0]  ;;  %v2334_v2 = vor.u32 %v2617_v59, %v2331_v62  ;;  %v2199_v59 = vld [vmem:[%s3902_s5 + $0x6c] sm:$0xf0] }
 0x38e   :  { %1572 = vmatpush.bf16.msrb.mxu3 %v2270_v8  ;;  %v2665_v4 = vld [vmem:[%s3902_s5 + $0x2ec] sm:$0xf] }
 0x38f   :  { %1608 = vmatpush.bf16.msra.mxu1 %v2486_v45  ;;  %v2438_v45 = vor.u32 %v2645_v47, %v2437_v44  ;;  %v2526_v7 = vor.u32 %v2665_v4, %v2523_v5  ;;  %v2656_v4 = vld [vmem:[%s3902_s5 + $0x2a4] sm:$0xf]  ;;  %v2487_v5 = vld [vmem:[%s3902_s5 + $0x2ac] sm:$0xf0] }
 0x390   :  { %1591 = vmatpush.bf16.msra.mxu0 %v2366_v9  ;;  %v2590_v9 = vld [vmem:[%s3902_s5 + $0x94] sm:$0xf] }
 0x391   :  { %1554 = vmatpush.bf16.msrb.mxu2 %v2162_v16 }
 0x392   :  { %1573 = vmatpush.bf16.msrb.mxu3 %v2258_v26  ;;  %v2662_v26 = vld [vmem:[%s3902_s5 + $0x2d4] sm:$0xf] }
 0x393   :  { %1609 = vmatpush.bf16.msra.mxu1 %v2474_v0  ;;  %v2641_v0 = vld [vmem:[%s3902_s5 + $0x22c] sm:$0xf]  ;;  %v2514_v31 = vor.u32 %v2662_v26, %v2511_v28 }
 0x394   :  { %1592 = vmatpush.bf16.msra.mxu0 %v2354_v27  ;;  %v2430_v6 = vor.u32 %v2641_v0, %v2427_v3  ;;  %v2202_v0 = vor.u32 %v2584_v56, %v2199_v59 }
 0x395   :  { %1555 = vmatpush.bf16.msrb.mxu2 %v2150_v34  ;;  %v2211_v34 = vld [vmem:[%s3902_s5 + $0x84] sm:$0xf0] }
 0x396   :  { %1574 = vmatpush.bf16.msrb.mxu3 %v2246_v41  ;;  %v2214_v36 = vor.u32 %v2587_v32, %v2211_v34  ;;  %v2635_v41 = vld [vmem:[%s3902_s5 + $0x1fc] sm:$0xf]  ;;  %v2475_v34 = vld [vmem:[%s3902_s5 + $0x294] sm:$0xf0] }
 0x397   :  { %1610 = vmatpush.bf16.msra.mxu1 %v2462_v12  ;;  %v2226_v12 = vor.u32 %v2590_v9, %v2223_v10 }
 0x398   :  { %1593 = vmatpush.bf16.msra.mxu0 %v2342_v43  ;;  %v2403_v43 = vld [vmem:[%s3902_s5 + $0x204] sm:$0xf0] }
 0x399   :  { %1624 = vmatpush.bf16.msra.mxu2 %v2238_v61  ;;  %v2608_v61 = vld [vmem:[%s3902_s5 + $0x124] sm:$0xf] }
 0x39a   :  { %1643 = vmatpush.bf16.msra.mxu3 %v2334_v2 }
 0x39b   :  { %1611 = vmatpush.bf16.msra.mxu1 %v2450_v22 }
 0x39c   :  { %1662 = vmatpush.bf16.msrb.mxu0 %v2430_v6 }
 0x39d   :  { %1625 = vmatpush.bf16.msra.mxu2 %v2226_v12 }
 0x39e   :  { %1644 = vmatpush.bf16.msra.mxu3 %v2322_v18 }
 0x39f   :  { %1612 = vmatpush.bf16.msra.mxu1 %v2438_v45  ;;  %v2310_v45 = vor.u32 %v2611_v35, %v2307_v40  ;;  %v2578_v35 = vld [vmem:[%s3902_s5 + $0x34] sm:$0xf] }
 0x3a0   :  { %1663 = vmatpush.bf16.msrb.mxu0 %v2418_v23  ;;  %v2283_v23 = vld [vmem:[%s3902_s5 + $0x114] sm:$0xf0] }
 0x3a1   :  { %1626 = vmatpush.bf16.msra.mxu2 %v2214_v36  ;;  %v2175_v36 = vld [vmem:[%s3902_s5 + $0x3c] sm:$0xf0] }
 0x3a2   :  { %1645 = vmatpush.bf16.msra.mxu3 %v2310_v45  ;;  %v2626_v45 = vld [vmem:[%s3902_s5 + $0x1b4] sm:$0xf] }
 0x3a3   :  { %1681 = vmatpush.bf16.msrb.mxu1 %v2526_v7 }
 0x3a5   :  { %1627 = vmatpush.bf16.msra.mxu2 %v2202_v0  ;;  %v2575_v0 = vld [vmem:[%s3902_s5 + $0x1c] sm:$0xf] }
 0x3a7   :  { %1682 = vmatpush.bf16.msrb.mxu1 %v2514_v31 }
 0x3de   :  { %v750_v48 = vpop.xlane.xlu0 %749 }
 0x3df   :  { %v766_v49 = vmax.f32 %v750_v48, 1e-24  ;;  %v2406_v48 = vor.u32 %v2635_v41, %v2403_v43 }
 0x3e1   :  { %2693 = vrsqrt.f32 %v766_v49  ;;  %vm776_vm2 = vweird.f32 %v766_v49  ;;  %1664 = vmatpush.bf16.msrb.mxu0 %v2406_v48 }
 0x3e5   :  { %v755_v50 = vpop.xlane.xlu1 %754 }
 0x3e6   :  { %v3246_v51 = vmax.f32 %v755_v50, 1e-24  ;;  %v2499_v50 = vld [vmem:[%s3902_s5 + $0x2c4] sm:$0xf0] }
 0x3e7   :  { %v2694_v52 = vpop.eup %2693 }
 0x3e8   :  { %2695 = vrsqrt.f32 %v3246_v51  ;;  %v771_v53 = vmul.f32 %v2694_v52, %v766_v49  ;;  %vm777_vm1 = vweird.f32 %v2694_v52  ;;  %v2659_v49 = vld [vmem:[%s3902_s5 + $0x2bc] sm:$0xf]  ;;  %vm786_vm5 = vweird.f32 %v3246_v51 }
 0x3e9   :  { %vm3299_vm3 = vmor %vm776_vm2, %vm777_vm1 }
 0x3ea   :  { %v772_v1 = vmul.f32 %v2694_v52, %v771_v53 }
 0x3ec   :  { %v773_v8 = vmul.f32 0.5, %v772_v1  ;;  %v2632_v1 = vld [vmem:[%s3902_s5 + $0x1e4] sm:$0xf] }
 0x3ee   :  { %v3279_v11 = vpop.eup %2695  ;;  %v774_v16 = vsub.f32 1.5, %v773_v8  ;;  %v2490_v8 = vor.u32 %v2656_v4, %v2487_v5 }
 0x3ef   :  { %v781_v17 = vmul.f32 %v3279_v11, %v3246_v51  ;;  %vm787_vm4 = vweird.f32 %v3279_v11 }
 0x3f0   :  { %v775_v22 = vmul.f32 %v2694_v52, %v774_v16  ;;  %vm788_vm6 = vmor %vm786_vm5, %vm787_vm4  ;;  %v2581_v16 = vld [vmem:[%s3902_s5 + $0x4c] sm:$0xf]  ;;  %vm1802_vm4 = vcmask 261120   ;;  %vm1959_vm5 = vcmask 140288  }
 0x3f1   :  { %v782_v30 = vmul.f32 %v3279_v11, %v781_v17  ;;  %v2187_v17 = vld [vmem:[%s3902_s5 + $0x54] sm:$0xf0] }
 0x3f2   :  { %v779_v44 = vsel %vm3299_vm3, %v2694_v52, %v775_v22  ;;  %v2190_v22 = vor.u32 %v2581_v16, %v2187_v17  ;;  %v2151_v16 = vld [vmem:[%s3902_s5 + $0xc] sm:$0xf0] }
 0x3f3   :  { %v783_v47 = vmul.f32 0.5, %v782_v30  ;;  %v810_v53 = vmul.f32 %v779_v44, %v2976_v37  ;;  %v811_v54 = vmul.f32 %v779_v44, %v2978_v38  ;;  %v812_v52 = vmul.f32 %v779_v44, %v2980_v39  ;;  %v2295_v39 = vld [vmem:[%s3902_s5 + $0x12c] sm:$0xf0] }
 0x3f4   :  { %v813_v37 = vmul.f32 %v779_v44, %v2998_v46  ;;  %v2502_v38 = vor.u32 %v2659_v49, %v2499_v50  ;;  %v2391_v46 = vld [vmem:[%s3902_s5 + $0x1ec] sm:$0xf0]  ;;  %v2298_v7 = vor.u32 %v2608_v61, %v2295_v39  ;;  %1628 = vmatpush.bf16.msra.mxu2 %v2190_v22  ;;  %v2602_v44 = vld [vmem:[%s3902_s5 + $0xf4] sm:$0xf]  ;;  %v2178_v61 = vor.u32 %v2578_v35, %v2175_v36  ;;  %v2163_v39 = vld [vmem:[%s3902_s5 + $0x24] sm:$0xf0] }
 0x3f5   :  { %v784_v62 = vsub.f32 1.5, %v783_v47  ;;  %v826_v2 = vmul.f32 %v810_v53, %v810_v53  ;;  %v827_v3 = vmul.f32 %v811_v54, %v811_v54  ;;  %v2394_v51 = vor.u32 %v2632_v1, %v2391_v46  ;;  %v2271_v47 = vld [vmem:[%s3902_s5 + $0xfc] sm:$0xf0]  ;;  %v2599_v1 = vld [vmem:[%s3902_s5 + $0xdc] sm:$0xf] }
 0x3f6   :  { %1683 = vmatpush.bf16.msrb.mxu1 %v2502_v38  ;;  %v828_v10 = vmul.f32 %v812_v52, %v812_v52  ;;  %v829_v15 = vmul.f32 %v813_v37, %v813_v37  ;;  %1646 = vmatpush.bf16.msra.mxu3 %v2298_v7  ;;  %v2274_v38 = vor.u32 %v2602_v44, %v2271_v47  ;;  %v2623_v7 = vld [vmem:[%s3902_s5 + $0x19c] sm:$0xf]  ;;  %v2620_v22 = vld [vmem:[%s3902_s5 + $0x184] sm:$0xf]  ;;  %v2337_v44 = vld [vmem:[%s3902_s5 + $0x170] sm:$0xf] }
 0x3f7   :  { %v785_v6 = vmul.f32 %v3279_v11, %v784_v62  ;;  %v842_v12 = vadd.f32 %v827_v3, %v826_v2  ;;  %1665 = vmatpush.bf16.msrb.mxu0 %v2394_v51 }
 0x3f8   :  { %v760_v9 = vpop.xlane.xlu1 %759  ;;  %1629 = vmatpush.bf16.msra.mxu2 %v2178_v61  ;;  %v2667_v61 = vld [vmem:[%s3902_s5 + $0x2f8] sm:$0xf0] }
 0x3f9   :  { %v789_v13 = vsel %vm788_vm6, %v3279_v11, %v785_v6  ;;  %v3367_v14 = vmax.f32 %v760_v9, 1e-24  ;;  %v843_v18 = vadd.f32 %v842_v12, %v828_v10  ;;  %v2605_v11 = vld [vmem:[%s3902_s5 + $0x10c] sm:$0xf]  ;;  %v2259_v6 = vld [vmem:[%s3902_s5 + $0xe4] sm:$0xf0] }
 0x3fa   :  { %v814_v25 = vmul.f32 %v789_v13, %v3002_v57  ;;  %v815_v26 = vmul.f32 %v789_v13, %v3004_v58  ;;  %v816_v27 = vmul.f32 %v789_v13, %v3008_v60  ;;  %v817_v28 = vmul.f32 %v789_v13, %v3010_v63  ;;  %1684 = vmatpush.bf16.msrb.mxu1 %v2490_v8  ;;  %v2629_v57 = vld [vmem:[%s3902_s5 + $0x1cc] sm:$0xf]  ;;  %v2379_v58 = vld [vmem:[%s3902_s5 + $0x1d4] sm:$0xf0]  ;;  %v2355_v9 = vld [vmem:[%s3902_s5 + $0x1a4] sm:$0xf0] }
 0x3fb   :  { %2697 = vrsqrt.f32 %v3367_v14  ;;  %v2653_v60 = vld [vmem:[%s3902_s5 + $0x28c] sm:$0xf]  ;;  %v844_v30 = vadd.f32 %v843_v18, %v829_v15  ;;  %v2286_v49 = vor.u32 %v2605_v11, %v2283_v23  ;;  %v2382_v50 = vor.u32 %v2629_v57, %v2379_v58  ;;  %v2647_v10 = vld [vmem:[%s3902_s5 + $0x25c] sm:$0xf]  ;;  %v2451_v12 = vld [vmem:[%s3902_s5 + $0x264] sm:$0xf0] }
 0x3fc   :  { %v3395_v31 = vpack.c.bf16 %v814_v25, %v810_v53  ;;  %v3397_v32 = vpack.c.bf16 %v815_v26, %v811_v54  ;;  %v3399_v63 = vpack.c.bf16 %v816_v27, %v812_v52  ;;  %v3410_v40 = vpack.c.bf16 %v817_v28, %v813_v37  ;;  %v2367_v53 = vld [vmem:[%s3902_s5 + $0x1bc] sm:$0xf0]  ;;  %v2650_v54 = vld [vmem:[%s3902_s5 + $0x274] sm:$0xf]  ;;  %v2572_v15 = vld [vmem:[%s3902_s5 + $0x4] sm:$0xf] }
 0x3fd   :  { %v830_v41 = vmul.f32 %v814_v25, %v814_v25  ;;  %v831_v43 = vmul.f32 %v815_v26, %v815_v26  ;;  %845 = vadd.xlane.f32.xlu1 %v844_v30  ;;  %v832_v48 = vmul.f32 %v816_v27, %v816_v27  ;;  %v2463_v52 = vld [vmem:[%s3902_s5 + $0x27c] sm:$0xf0]  ;;  %v2478_v59 = vor.u32 %v2653_v60, %v2475_v34  ;;  %v2596_v27 = vld [vmem:[%s3902_s5 + $0xc4] sm:$0xf]  ;;  %v2247_v11 = vld [vmem:[%s3902_s5 + $0xcc] sm:$0xf0] }
 0x3fe   :  { %1556 = vmatmul.bf16.vlgmr.msrb.gmra.mxu2 %v3395_v31  ;;  %1575 = vmatmul.bf16.vlgmr.msrb.gmra.mxu3 %v3397_v32  ;;  %v833_v37 = vmul.f32 %v817_v28, %v817_v28  ;;  %v2370_v4 = vor.u32 %v2626_v45, %v2367_v53  ;;  %v2466_v5 = vor.u32 %v2650_v54, %v2463_v52  ;;  %v2343_v57 = vld [vmem:[%s3902_s5 + $0x18c] sm:$0xf0]  ;;  %v2644_v58 = vld [vmem:[%s3902_s5 + $0x244] sm:$0xf]  ;;  %vm796_vm8 = vweird.f32 %v3367_v14  ;;  %v2643_v54 = vld [vmem:[%s3902_s5 + $0x238] sm:$0xf0] }
 0x3ff   :  { %1594 = vmatmul.bf16.vlgmr.msra.gmra.mxu0 %v3399_v63  ;;  %v847_v56 = vadd.f32 %v831_v43, %v830_v41  ;;  %1613 = vmatmul.bf16.vlgmr.msra.gmra.mxu1 %v3410_v40  ;;  %v2166_v8 = vor.u32 %v2575_v0, %v2163_v39  ;;  %v2262_v18 = vor.u32 %v2599_v1, %v2259_v6  ;;  %v2439_v60 = vld [vmem:[%s3902_s5 + $0x24c] sm:$0xf0]  ;;  %v2595_v43 = vld [vmem:[%s3902_s5 + $0xb8] sm:$0xf0]  ;;  %v2592_v0 = vld [vmem:[%s3902_s5 + $0xa0] sm:$0xf0] }
 0x400   :  { %v765_v62 = vpop.xlane.xlu1 %764  ;;  %1647 = vmatpush.bf16.msra.mxu3 %v2286_v49  ;;  %1666 = vmatpush.bf16.msrb.mxu0 %v2382_v50  ;;  %v2358_v25 = vor.u32 %v2623_v7, %v2355_v9  ;;  %v2454_v26 = vor.u32 %v2647_v10, %v2451_v12  ;;  %v2154_v28 = vor.u32 %v2572_v15, %v2151_v16  ;;  %v2241_v41 = vld [vmem:[%s3902_s5 + $0xb0] sm:$0xf]  ;;  %v2619_v50 = vld [vmem:[%s3902_s5 + $0x178] sm:$0xf0]  ;;  %v2325_v39 = vld [vmem:[%s3902_s5 + $0x158] sm:$0xf] }
 0x401   :  { %v2698_v2 = vpop.eup %2697  ;;  %v3443_v3 = vmax.f32 %v765_v62, 1e-24  ;;  %v848_v46 = vadd.f32 %v847_v56, %v832_v48  ;;  %1685 = vmatpush.bf16.msrb.mxu1 %v2478_v59  ;;  %1630 = vmatpush.bf16.msra.mxu2 %v2166_v8  ;;  %v2250_v34 = vor.u32 %v2596_v27, %v2247_v11  ;;  %v2346_v36 = vor.u32 %v2620_v22, %v2343_v57  ;;  %v2433_v53 = vld [vmem:[%s3902_s5 + $0x230] sm:$0xf]  ;;  %v2640_v6 = vld [vmem:[%s3902_s5 + $0x220] sm:$0xf0] }
 0x402   :  { %v791_v51 = vmul.f32 %v2698_v2, %v3367_v14  ;;  %vm797_vm7 = vweird.f32 %v2698_v2  ;;  %v2442_v48 = vor.u32 %v2644_v58, %v2439_v60  ;;  %v2242_v49 = vor.u32 %v2595_v43, %v2241_v41  ;;  %v2529_v59 = vld [vmem:[%s3902_s5 + $0x2f0] sm:$0xf]  ;;  %v2229_v14 = vld [vmem:[%s3902_s5 + $0x98] sm:$0xf]  ;;  %v2589_v15 = vld [vmem:[%s3902_s5 + $0x88] sm:$0xf0] }
 0x403   :  { %2699 = vrsqrt.f32 %v3443_v3  ;;  %v849_v13 = vadd.f32 %v848_v46, %v833_v37  ;;  %vm798_vm9 = vmor %vm796_vm8, %vm797_vm7  ;;  %v2338_v52 = vor.u32 %v2619_v50, %v2337_v44  ;;  %v2434_v56 = vor.u32 %v2643_v54, %v2433_v53  ;;  %v2313_v16 = vld [vmem:[%s3902_s5 + $0x140] sm:$0xf]  ;;  %v2661_v60 = vld [vmem:[%s3902_s5 + $0x2c8] sm:$0xf0] }
 0x404   :  { %v792_v17 = vmul.f32 %v2698_v2, %v791_v51  ;;  %1648 = vmatpush.bf16.msra.mxu3 %v2274_v38  ;;  %1667 = vmatpush.bf16.msrb.mxu0 %v2370_v4  ;;  %v2530_v38 = vor.u32 %v2667_v61, %v2529_v59  ;;  %v2616_v4 = vld [vmem:[%s3902_s5 + $0x160] sm:$0xf0]  ;;  %vm806_vm11 = vweird.f32 %v3443_v3  ;;  %v2409_v11 = vld [vmem:[%s3902_s5 + $0x200] sm:$0xf]  ;;  %v2301_v43 = vld [vmem:[%s3902_s5 + $0x128] sm:$0xf] }
 0x405   :  { %1686 = vmatpush.bf16.msrb.mxu1 %v2466_v5  ;;  %850 = vadd.xlane.f32.xlu1 %v849_v13  ;;  %v2421_v5 = vld [vmem:[%s3902_s5 + $0x218] sm:$0xf]  ;;  %v2664_v51 = vld [vmem:[%s3902_s5 + $0x2e0] sm:$0xf0]  ;;  %v2217_v13 = vld [vmem:[%s3902_s5 + $0x80] sm:$0xf] }
 0x406   :  { %v793_v23 = vmul.f32 0.5, %v792_v17  ;;  %1631 = vmatpush.bf16.msra.mxu2 %v2154_v28  ;;  %v2422_v12 = vor.u32 %v2640_v6, %v2421_v5  ;;  %v2634_v50 = vld [vmem:[%s3902_s5 + $0x1f0] sm:$0xf0]  ;;  %v2631_v5 = vld [vmem:[%s3902_s5 + $0x1d8] sm:$0xf0] }
 0x408   :  { %v794_v30 = vsub.f32 1.5, %v793_v23  ;;  %1649 = vmatpush.bf16.msra.mxu3 %v2262_v18  ;;  %1668 = vmatpush.bf16.msrb.mxu0 %v2358_v25  ;;  %v2218_v18 = vor.u32 %v2589_v15, %v2217_v13  ;;  %v2613_v25 = vld [vmem:[%s3902_s5 + $0x148] sm:$0xf0]  ;;  %v2277_v13 = vld [vmem:[%s3902_s5 + $0xf8] sm:$0xf] }
 0x409   :  { %v3486_v35 = vpop.eup %2699  ;;  %1687 = vmatpush.bf16.msrb.mxu1 %v2454_v26  ;;  %v2637_v23 = vld [vmem:[%s3902_s5 + $0x208] sm:$0xf0]  ;;  %v2314_v22 = vor.u32 %v2613_v25, %v2313_v16  ;;  %v2604_v15 = vld [vmem:[%s3902_s5 + $0x100] sm:$0xf0] }
 0x40a   :  { %v795_v47 = vmul.f32 %v2698_v2, %v794_v30  ;;  %v801_v45 = vmul.f32 %v3486_v35, %v3443_v3  ;;  %1700 = vmatpush.bf16.msrb.mxu2 %v2242_v49  ;;  %vm807_vm10 = vweird.f32 %v3486_v35  ;;  %v2505_v3 = vld [vmem:[%s3902_s5 + $0x2c0] sm:$0xf]  ;;  %v2205_v30 = vld [vmem:[%s3902_s5 + $0x68] sm:$0xf]  ;;  %v2410_v41 = vor.u32 %v2637_v23, %v2409_v11  ;;  %v2610_v49 = vld [vmem:[%s3902_s5 + $0x130] sm:$0xf0] }
 0x40b   :  { %vm808_vm12 = vmor %vm806_vm11, %vm807_vm10  ;;  %v2652_v11 = vld [vmem:[%s3902_s5 + $0x280] sm:$0xf0]  ;;  %v2169_v23 = vld [vmem:[%s3902_s5 + $0x20] sm:$0xf] }
 0x40c   :  { %v799_v62 = vsel %vm798_vm9, %v2698_v2, %v795_v47  ;;  %v802_v37 = vmul.f32 %v3486_v35, %v801_v45  ;;  %1650 = vmatpush.bf16.msra.mxu3 %v2250_v34  ;;  %1669 = vmatpush.bf16.msrb.mxu0 %v2346_v36  ;;  %v2586_v34 = vld [vmem:[%s3902_s5 + $0x70] sm:$0xf0] }
 0x40d   :  { %v818_v1 = vmul.f32 %v799_v62, %v3026_v20  ;;  %v819_v2 = vmul.f32 %v799_v62, %v3028_v21  ;;  %v820_v46 = vmul.f32 %v799_v62, %v3030_v24  ;;  %1688 = vmatpush.bf16.msrb.mxu1 %v2442_v48  ;;  %v2230_v20 = vor.u32 %v2592_v0, %v2229_v14  ;;  %v2517_v24 = vld [vmem:[%s3902_s5 + $0x2d8] sm:$0xf]  ;;  %v2193_v14 = vld [vmem:[%s3902_s5 + $0x50] sm:$0xf]  ;;  %v2583_v0 = vld [vmem:[%s3902_s5 + $0x58] sm:$0xf0] }
 0x40e   :  { %v803_v7 = vmul.f32 0.5, %v802_v37  ;;  %v2326_v21 = vor.u32 %v2616_v4, %v2325_v39  ;;  %v821_v8 = vmul.f32 %v799_v62, %v3032_v29  ;;  %v2518_v29 = vor.u32 %v2664_v51, %v2517_v24  ;;  %v2289_v39 = vld [vmem:[%s3902_s5 + $0x110] sm:$0xf] }
 0x40f   :  { %v834_v9 = vmul.f32 %v818_v1, %v818_v1  ;;  %v835_v10 = vmul.f32 %v819_v2, %v819_v2  ;;  %1701 = vmatpush.bf16.msrb.mxu2 %v2230_v20  ;;  %v836_v26 = vmul.f32 %v820_v46, %v820_v46  ;;  %v2206_v54 = vor.u32 %v2586_v34, %v2205_v30  ;;  %v2385_v4 = vld [vmem:[%s3902_s5 + $0x1d0] sm:$0xf]  ;;  %v2361_v30 = vld [vmem:[%s3902_s5 + $0x1a0] sm:$0xf]  ;;  %v2625_v34 = vld [vmem:[%s3902_s5 + $0x1a8] sm:$0xf0] }
 0x410   :  { %1719 = vmatpush.bf16.msrb.mxu3 %v2338_v52  ;;  %1738 = vmatpush.bf16.msra.mxu0 %v2434_v56  ;;  %v804_v17 = vsub.f32 1.5, %v803_v7  ;;  %v837_v57 = vmul.f32 %v821_v8, %v821_v8  ;;  %v2302_v62 = vor.u32 %v2610_v49, %v2301_v43  ;;  %v2194_v7 = vor.u32 %v2583_v0, %v2193_v14  ;;  %v2481_v20 = vld [vmem:[%s3902_s5 + $0x290] sm:$0xf]  ;;  %v2649_v43 = vld [vmem:[%s3902_s5 + $0x268] sm:$0xf0] }
 0x411   :  { %1757 = vmatpush.bf16.msra.mxu1 %v2530_v38  ;;  %v852_v27 = vadd.f32 %v835_v10, %v834_v9  ;;  %v2658_v38 = vld [vmem:[%s3902_s5 + $0x2b0] sm:$0xf0]  ;;  %v2181_v9 = vld [vmem:[%s3902_s5 + $0x38] sm:$0xf]  ;;  %v2580_v10 = vld [vmem:[%s3902_s5 + $0x40] sm:$0xf0]  ;;  %v2362_v49 = vor.u32 %v2625_v34, %v2361_v30 }
 0x412   :  { %v805_v28 = vmul.f32 %v3486_v35, %v804_v17  ;;  %v2373_v17 = vld [vmem:[%s3902_s5 + $0x1b8] sm:$0xf]  ;;  %v2182_v25 = vor.u32 %v2580_v10, %v2181_v9  ;;  %v1845_v34 = vld [vmem:[%s3904_s7 + $0x8] sm:$0xff] }
 0x413   :  { %v853_v58 = vadd.f32 %v852_v27, %v836_v26  ;;  %1702 = vmatpush.bf16.msrb.mxu2 %v2218_v18  ;;  %v2469_v26 = vld [vmem:[%s3902_s5 + $0x278] sm:$0xf]  ;;  %v2278_v27 = vor.u32 %v2604_v15, %v2277_v13  ;;  %v1849_v15 = vld [vmem:[%s3904_s7 + $0x28] sm:$0xff] }
 0x414   :  { %1720 = vmatpush.bf16.msrb.mxu3 %v2326_v21  ;;  %1739 = vmatpush.bf16.msra.mxu0 %v2422_v12  ;;  %v809_v36 = vsel %vm808_vm12, %v3486_v35, %v805_v28  ;;  %v2397_v35 = vld [vmem:[%s3902_s5 + $0x1e8] sm:$0xf]  ;;  %v2386_v12 = vor.u32 %v2631_v5, %v2385_v4  ;;  %v2577_v28 = vld [vmem:[%s3902_s5 + $0x28] sm:$0xf0]  ;;  %v1854_v4 = vld [vmem:[%s3904_s7 + $0x50] sm:$0xff] }
 0x415   :  { %1758 = vmatpush.bf16.msra.mxu1 %v2518_v29  ;;  %v854_v44 = vadd.f32 %v853_v58, %v837_v57  ;;  %v822_v47 = vmul.f32 %v809_v36, %v3021_v55  ;;  %v823_v45 = vmul.f32 %v809_v36, %v3023_v19  ;;  %v824_v48 = vmul.f32 %v809_v36, %v3044_v33  ;;  %v2628_v29 = vld [vmem:[%s3902_s5 + $0x1c0] sm:$0xf0]  ;;  %v2601_v57 = vld [vmem:[%s3902_s5 + $0xe8] sm:$0xf0] }
 0x416   :  { %v825_v53 = vmul.f32 %v809_v36, %v3048_v42  ;;  %v2506_v55 = vor.u32 %v2661_v60, %v2505_v3  ;;  %v2398_v37 = vor.u32 %v2634_v50, %v2397_v35  ;;  %v2493_v42 = vld [vmem:[%s3902_s5 + $0x2a8] sm:$0xf]  ;;  %v2265_v3 = vld [vmem:[%s3902_s5 + $0xe0] sm:$0xf]  ;;  %v2470_v58 = vor.u32 %v2652_v11, %v2469_v26  ;;  %v1847_v11 = vld [vmem:[%s3904_s7 + $0x18] sm:$0xff] }
 0x417   :  { %855 = vadd.xlane.f32.xlu1 %v854_v44  ;;  %v3599_v19 = vpack.c.bf16 %v822_v47, %v818_v1  ;;  %v3601_v33 = vpack.c.bf16 %v823_v45, %v819_v2  ;;  %v3603_v52 = vpack.c.bf16 %v824_v48, %v820_v46  ;;  %v838_v56 = vmul.f32 %v822_v47, %v822_v47  ;;  %v2607_v46 = vld [vmem:[%s3902_s5 + $0x118] sm:$0xf0]  ;;  %v2157_v44 = vld [vmem:[%s3902_s5 + $0x8] sm:$0xf]  ;;  %v2574_v47 = vld [vmem:[%s3902_s5 + $0x10] sm:$0xf0] }
 0x418   :  { %1721 = vmatpush.bf16.msrb.mxu3 %v2314_v22  ;;  %v3605_v59 = vpack.c.bf16 %v825_v53, %v821_v8  ;;  %v839_v61 = vmul.f32 %v823_v45, %v823_v45  ;;  %1740 = vmatpush.bf16.msra.mxu0 %v2410_v41  ;;  %v840_v1 = vmul.f32 %v824_v48, %v824_v48  ;;  %v2655_v8 = vld [vmem:[%s3902_s5 + $0x298] sm:$0xf0]  ;;  %v2457_v41 = vld [vmem:[%s3902_s5 + $0x260] sm:$0xf]  ;;  %v2253_v45 = vld [vmem:[%s3902_s5 + $0xc8] sm:$0xf] }
 0x419   :  { %1561 = vmatmul.bf16.gmra.mxu2 %v3599_v19  ;;  %1580 = vmatmul.bf16.gmra.mxu3 %v3601_v33  ;;  %v2494_v6 = vor.u32 %v2658_v38, %v2493_v42  ;;  %v841_v21 = vmul.f32 %v825_v53, %v825_v53  ;;  %v2290_v51 = vor.u32 %v2607_v46, %v2289_v39  ;;  %v2598_v48 = vld [vmem:[%s3902_s5 + $0xd0] sm:$0xf0]  ;;  %v2349_v50 = vld [vmem:[%s3902_s5 + $0x188] sm:$0xf] }
 0x41a   :  { %1599 = vmatmul.bf16.gmra.mxu0 %v3603_v52  ;;  %1618 = vmatmul.bf16.gmra.mxu1 %v3605_v59  ;;  %v857_v2 = vadd.f32 %v839_v61, %v838_v56  ;;  %v2482_v18 = vor.u32 %v2655_v8, %v2481_v20  ;;  %v2374_v22 = vor.u32 %v2628_v29, %v2373_v17  ;;  %v2445_v56 = vld [vmem:[%s3902_s5 + $0x248] sm:$0xf]  ;;  %v2646_v61 = vld [vmem:[%s3902_s5 + $0x250] sm:$0xf0]  ;;  %v1852_v20 = vld [vmem:[%s3904_s7 + $0x40] sm:$0xff] }
 0x41b   :  { %1759 = vmatpush.bf16.msra.mxu1 %v2506_v55  ;;  %1703 = vmatpush.bf16.msrb.mxu2 %v2206_v54  ;;  %v2170_v60 = vor.u32 %v2577_v28, %v2169_v23  ;;  %v2266_v36 = vor.u32 %v2601_v57, %v2265_v3  ;;  %v2458_v35 = vor.u32 %v2649_v43, %v2457_v41  ;;  %v2622_v54 = vld [vmem:[%s3902_s5 + $0x190] sm:$0xf0]  ;;  %v1776_v41 = vld [vmem:[%s3903_s6] sm:$0xff] }
 0x41c   :  { %v858_v24 = vadd.f32 %v857_v2, %v840_v1  ;;  %1722 = vmatpush.bf16.msrb.mxu3 %v2302_v62  ;;  %1741 = vmatpush.bf16.msra.mxu0 %v2398_v37  ;;  %v2158_v53 = vor.u32 %v2574_v47, %v2157_v44  ;;  %v2254_v55 = vor.u32 %v2598_v48, %v2253_v45  ;;  %v1855_v2 = vld [vmem:[%s3904_s7 + $0x58] sm:$0xff]  ;;  %v1846_v57 = vld [vmem:[%s3904_s7 + $0x10] sm:$0xff]  ;;  %v1844_v45 = vld [vmem:[%s3904_s7] sm:$0xff] }
 0x41d   :  { %v2350_v62 = vor.u32 %v2622_v54, %v2349_v50  ;;  %v2446_v37 = vor.u32 %v2646_v61, %v2445_v56  ;;  %v1875_v50 = vld [vmem:[%s3904_s7 + $0xf8] sm:$0xff] }
 0x41e   :  { %v859_v16 = vadd.f32 %v858_v24, %v841_v21 }
 0x41f   :  { %1760 = vmatpush.bf16.msra.mxu1 %v2494_v6  ;;  %1704 = vmatpush.bf16.msrb.mxu2 %v2194_v7  ;;  %v1853_v6 = vld [vmem:[%s3904_s7 + $0x48] sm:$0xff] }
 0x420   :  { %860 = vadd.xlane.f32.xlu1 %v859_v16  ;;  %1723 = vmatpush.bf16.msrb.mxu3 %v2290_v51  ;;  %v1851_v51 = vld [vmem:[%s3904_s7 + $0x38] sm:$0xff] }
 0x421   :  { %1742 = vmatpush.bf16.msra.mxu0 %v2386_v12  ;;  %v1850_v12 = vld [vmem:[%s3904_s7 + $0x30] sm:$0xff] }
 0x423   :  { %1761 = vmatpush.bf16.msra.mxu1 %v2482_v18  ;;  %1705 = vmatpush.bf16.msrb.mxu2 %v2182_v25  ;;  %v1848_v18 = vld [vmem:[%s3904_s7 + $0x20] sm:$0xff] }
 0x424   :  { %1724 = vmatpush.bf16.msrb.mxu3 %v2278_v27 }
 0x425   :  { %1743 = vmatpush.bf16.msra.mxu0 %v2374_v22 }
 0x427   :  { %1762 = vmatpush.bf16.msra.mxu1 %v2470_v58  ;;  %1706 = vmatpush.bf16.msrb.mxu2 %v2170_v60  ;;  %v1779_v60 = vld [vmem:[%s3903_s6 + $0x18] sm:$0xff] }
 0x428   :  { %1725 = vmatpush.bf16.msrb.mxu3 %v2266_v36 }
 0x429   :  { %1632 = vmatmul.bf16.vlgmr.msra.gmra.mxu2 %v3395_v31  ;;  %1651 = vmatmul.bf16.vlgmr.msra.gmra.mxu3 %v3397_v32 }
 0x42a   :  { %1670 = vmatmul.bf16.vlgmr.msrb.gmra.mxu0 %v3399_v63  ;;  %1689 = vmatmul.bf16.vlgmr.msrb.gmra.mxu1 %v3410_v40 }
 0x42b   :  { %1744 = vmatpush.bf16.msra.mxu0 %v2362_v49  ;;  %1763 = vmatpush.bf16.msra.mxu1 %v2458_v35 }
 0x42c   :  { %1707 = vmatpush.bf16.msrb.mxu2 %v2158_v53  ;;  %1726 = vmatpush.bf16.msrb.mxu3 %v2254_v55 }
 0x42f   :  { %1745 = vmatpush.bf16.msra.mxu0 %v2350_v62  ;;  %1764 = vmatpush.bf16.msra.mxu1 %v2446_v37  ;;  %v1874_v37 = vld [vmem:[%s3904_s7 + $0xf0] sm:$0xff] }
 0x430   :  { %1903 = vmatpush.msra.mxu3 %v1875_v50  ;;  %v1863_v50 = vld [vmem:[%s3904_s7 + $0x98] sm:$0xff] }
 0x432   :  { %1904 = vmatpush.msra.mxu3 %v1874_v37 }
 0x439   :  { %1637 = vmatmul.bf16.gmra.mxu2 %v3599_v19  ;;  %1656 = vmatmul.bf16.gmra.mxu3 %v3601_v33 }
 0x43a   :  { %1675 = vmatmul.bf16.gmra.mxu0 %v3603_v52  ;;  %1694 = vmatmul.bf16.gmra.mxu1 %v3605_v59 }
 0x449   :  { %1708 = vmatmul.bf16.vlgmr.msrb.gmra.mxu2 %v3395_v31  ;;  %1727 = vmatmul.bf16.vlgmr.msrb.gmra.mxu3 %v3397_v32  ;;  %v1859_v31 = vld [vmem:[%s3904_s7 + $0x78] sm:$0xff] }
 0x44a   :  { %1746 = vmatmul.bf16.vlgmr.msra.gmra.mxu0 %v3399_v63  ;;  %1765 = vmatmul.bf16.vlgmr.msra.gmra.mxu1 %v3410_v40  ;;  %v1858_v63 = vld [vmem:[%s3904_s7 + $0x70] sm:$0xff]  ;;  %v1857_v40 = vld [vmem:[%s3904_s7 + $0x68] sm:$0xff] }
 0x44b   :  { %1883 = vmatpush.msra.mxu2 %v1859_v31  ;;  %v1872_v31 = vld [vmem:[%s3904_s7 + $0xe0] sm:$0xff] }
 0x44d   :  { %1884 = vmatpush.msra.mxu2 %v1858_v63 }
 0x44f   :  { %1885 = vmatpush.msra.mxu2 %v1857_v40 }
 0x459   :  { %1713 = vmatmul.bf16.gmra.mxu2 %v3599_v19  ;;  %1732 = vmatmul.bf16.gmra.mxu3 %v3601_v33 }
 0x45a   :  { %1751 = vmatmul.bf16.gmra.mxu0 %v3603_v52  ;;  %1770 = vmatmul.bf16.gmra.mxu1 %v3605_v59  ;;  %v1856_v59 = vld [vmem:[%s3904_s7 + $0x60] sm:$0xff] }
 0x45b   :  { %1886 = vmatpush.msra.mxu2 %v1856_v59 }
 0x45d   :  { %1887 = vmatpush.msra.mxu2 %v1855_v2 }
 0x45f   :  { %1888 = vmatpush.msra.mxu2 %v1854_v4  ;;  %v1870_v4 = vld [vmem:[%s3904_s7 + $0xd0] sm:$0xff] }
 0x461   :  { %1889 = vmatpush.msra.mxu2 %v1853_v6 }
 0x463   :  { %1890 = vmatpush.msra.mxu2 %v1852_v20  ;;  %v1869_v20 = vld [vmem:[%s3904_s7 + $0xc8] sm:$0xff] }
 0x465   :  { %1891 = vmatpush.msra.mxu2 %v1851_v51 }
 0x467   :  { %1892 = vmatpush.msra.mxu2 %v1850_v12  ;;  %v1868_v12 = vld [vmem:[%s3904_s7 + $0xc0] sm:$0xff] }
 0x469   :  { %1893 = vmatpush.msra.mxu2 %v1849_v15 }
 0x46b   :  { %1894 = vmatpush.msra.mxu2 %v1848_v18 }
 0x46d   :  { %1895 = vmatpush.msra.mxu2 %v1847_v11 }
 0x46f   :  { %1896 = vmatpush.msra.mxu2 %v1846_v57  ;;  %v1865_v57 = vld [vmem:[%s3904_s7 + $0xa8] sm:$0xff] }
 0x470   :  { %v846_v42 = vpop.xlane.xlu1 %845 }
 0x471   :  { %1897 = vmatpush.msra.mxu2 %v1845_v34 }
 0x473   :  { %1898 = vmatpush.msra.mxu2 %v1844_v45 }
 0x478   :  { %v851_v38 = vpop.xlane.xlu1 %850 }
 0x479   :  { %v862_v14 = vadd.f32 %v851_v38, %v846_v42 }
 0x47b   :  { %v863_v0 = vrot.slane %v862_v14, 4 }
 0x47c   :  { %v1595_v39 = vpop.f32.mrf.mxu0  ;;  %v1614_v1 = vpop.f32.mrf.mxu1 }
 0x47d   :  { %v864_v32 = vadd.f32 %v863_v0, %v862_v14  ;;  %v1873_v14 = vld [vmem:[%s3904_s7 + $0xe8] sm:$0xff] }
 0x47e   :  { %1905 = vmatpush.msra.mxu3 %v1873_v14  ;;  %v1861_v14 = vld [vmem:[%s3904_s7 + $0x88] sm:$0xff] }
 0x47f   :  { %v865_v19 = vrot.slane %v864_v32, 2 }
 0x480   :  { %1906 = vmatpush.msra.mxu3 %v1872_v31 }
 0x481   :  { %v1557_v33 = vpop.f32.mrf.mxu2  ;;  %v1576_v52 = vpop.f32.mrf.mxu3  ;;  %v866_v46 = vadd.f32 %v865_v19, %v864_v32 }
 0x482   :  { %v1577_v17 = vadd.f32 %v1576_v52, %v1557_v33  ;;  %v1871_v52 = vld [vmem:[%s3904_s7 + $0xd8] sm:$0xff] }
 0x483   :  { %v867_v7 = vrot.slane %v866_v46, 1  ;;  %1907 = vmatpush.msra.mxu3 %v1871_v52 }
 0x484   :  { %v1597_v9 = vpop.f32.mrf.mxu0  ;;  %v1616_v10 = vpop.f32.mrf.mxu1  ;;  %v1596_v23 = vadd.f32 %v1595_v39, %v1577_v17 }
 0x485   :  { %v868_v8 = vadd.f32 %v867_v7, %v866_v46  ;;  %1908 = vmatpush.msra.mxu3 %v1870_v4 }
 0x486   :  { %v1615_v36 = vadd.f32 %v1614_v1, %v1596_v23  ;;  %v1866_v23 = vld [vmem:[%s3904_s7 + $0xb0] sm:$0xff] }
 0x487   :  { %v3762_v16 = vmax.f32 %v868_v8, 1e-24  ;;  %1909 = vmatpush.msra.mxu3 %v1869_v20 }
 0x488   :  { %v1782_v53 = vmul.f32 %v1776_v41, %v1615_v36  ;;  %v1864_v36 = vld [vmem:[%s3904_s7 + $0xa0] sm:$0xff] }
 0x489   :  { %v1559_v21 = vpop.f32.mrf.mxu2  ;;  %v1578_v24 = vpop.f32.mrf.mxu3  ;;  %2701 = vrsqrt.f32 %v3762_v16  ;;  %1910 = vmatpush.msra.mxu3 %v1868_v12  ;;  %vm876_vm15 = vweird.f32 %v3762_v16 }
 0x48a   :  { %v856_v5 = vpop.xlane.xlu1 %855  ;;  %v1579_v13 = vadd.f32 %v1578_v24, %v1559_v21 }
 0x48c   :  { %v1598_v26 = vadd.f32 %v1597_v9, %v1579_v13 }
 0x48e   :  { %v1617_v58 = vadd.f32 %v1616_v10, %v1598_v26 }
 0x48f   :  { %v3786_v48 = vpop.eup %2701 }
 0x490   :  { %v1785_v49 = vmul.f32 %v1779_v60, %v1617_v58  ;;  %v871_v61 = vmul.f32 %v3786_v48, %v3762_v16  ;;  %vm877_vm13 = vweird.f32 %v3786_v48 }
 0x491   :  { %vm3833_vm1 = vmor %vm876_vm15, %vm877_vm13 }
 0x492   :  { %v1788_v42 = vadd.f32 %v1785_v49, %v1782_v53  ;;  %v872_v40 = vmul.f32 %v3786_v48, %v871_v61 }
 0x493   :  { %v861_v29 = vpop.xlane.xlu1 %860 }
 0x494   :  { %v880_v25 = vadd.f32 %v861_v29, %v856_v5  ;;  %v1789_v19 = vrot.slane %v1788_v42, 4  ;;  %v873_v46 = vmul.f32 0.5, %v872_v40  ;;  %v1867_v29 = vld [vmem:[%s3904_s7 + $0xb8] sm:$0xff] }
 0x495   :  { %1911 = vmatpush.msra.mxu3 %v1867_v29 }
 0x496   :  { %v881_v27 = vrot.slane %v880_v25, 4  ;;  %v1790_v5 = vadd.f32 %v1789_v19, %v1788_v42  ;;  %v874_v10 = vsub.f32 1.5, %v873_v46 }
 0x497   :  { %v1600_v28 = vpop.f32.mrf.mxu0  ;;  %v1619_v22 = vpop.f32.mrf.mxu1  ;;  %1912 = vmatpush.msra.mxu3 %v1866_v23 }
 0x498   :  { %v882_v3 = vadd.f32 %v881_v27, %v880_v25  ;;  %v1791_v17 = vrot.slane %v1790_v5, 2  ;;  %v875_v11 = vmul.f32 %v3786_v48, %v874_v10 }
 0x499   :  { %1913 = vmatpush.msra.mxu3 %v1865_v57 }
 0x49a   :  { %v883_v30 = vrot.slane %v882_v3, 2 }
 0x49b   :  { %1914 = vmatpush.msra.mxu3 %v1864_v36 }
 0x49c   :  { %v884_v43 = vadd.f32 %v883_v30, %v882_v3  ;;  %v1562_v44 = vpop.f32.mrf.mxu2  ;;  %v1581_v47 = vpop.f32.mrf.mxu3  ;;  %v1792_v3 = vadd.f32 %v1791_v17, %v1790_v5 }
 0x49d   :  { %v1582_v55 = vadd.f32 %v1581_v47, %v1562_v44  ;;  %1915 = vmatpush.msra.mxu3 %v1863_v50 }
 0x49e   :  { %v885_v35 = vrot.slane %v884_v43, 1  ;;  %v1793_v45 = vrot.slane %v1792_v3, 1 }
 0x49f   :  { %v1602_v54 = vpop.f32.mrf.mxu0  ;;  %v1621_v56 = vpop.f32.mrf.mxu1  ;;  %v1601_v0 = vadd.f32 %v1600_v28, %v1582_v55 }
 0x4a0   :  { %v886_v62 = vadd.f32 %v885_v35, %v884_v43  ;;  %v879_v43 = vsel %vm3833_vm1, %v3786_v48, %v875_v11  ;;  %v1862_v48 = vld [vmem:[%s3904_s7 + $0x90] sm:$0xff]  ;;  %v1794_v37 = vadd.f32 %v1793_v45, %v1792_v3  ;;  %v1876_v11 = vld [vmem:[%s3904_s7 + $0x100] sm:$0xff] }
 0x4a1   :  { %v1620_v59 = vadd.f32 %v1619_v22, %v1601_v0  ;;  %1916 = vmatpush.msra.mxu3 %v1862_v48 }
 0x4a2   :  { %v3796_v38 = vmax.f32 %v886_v62, 1e-24 }
 0x4a3   :  { %v1812_v24 = vmul.f32 %v1776_v41, %v1620_v59  ;;  %1917 = vmatpush.msra.mxu3 %v1861_v14 }
 0x4a4   :  { %2703 = vrsqrt.f32 %v3796_v38  ;;  %v1564_v32 = vpop.f32.mrf.mxu2  ;;  %v1583_v63 = vpop.f32.mrf.mxu3  ;;  %vm894_vm2 = vweird.f32 %v3796_v38 }
 0x4a5   :  { %v1584_v33 = vadd.f32 %v1583_v63, %v1564_v32  ;;  %v1860_v32 = vld [vmem:[%s3904_s7 + $0x80] sm:$0xff]  ;;  %v1777_v63 = vld [vmem:[%s3903_s6 + $0x8] sm:$0xff] }
 0x4a6   :  { %1918 = vmatpush.msra.mxu3 %v1860_v32 }
 0x4a7   :  { %v1603_v39 = vadd.f32 %v1602_v54, %v1584_v33  ;;  %v1671_v1 = vpop.f32.mrf.mxu0  ;;  %v3809_v2 = vpop.f32.mrf.mxu1 }
 0x4a9   :  { %v1622_v6 = vadd.f32 %v1621_v56, %v1603_v39 }
 0x4aa   :  { %v2704_v7 = vpop.eup %2703 }
 0x4ab   :  { %v889_v21 = vmul.f32 %v2704_v7, %v3796_v38  ;;  %v1815_v51 = vmul.f32 %v1779_v60, %v1622_v6  ;;  %vm895_vm14 = vweird.f32 %v2704_v7  ;;  %v1780_v38 = vld [vmem:[%s3903_s6 + $0x20] sm:$0xff] }
 0x4ac   :  { %v1633_v8 = vpop.f32.mrf.mxu2  ;;  %v1652_v9 = vpop.f32.mrf.mxu3  ;;  %vm896_vm3 = vmor %vm894_vm2, %vm895_vm14 }
 0x4ad   :  { %v1818_v13 = vadd.f32 %v1815_v51, %v1812_v24  ;;  %v890_v15 = vmul.f32 %v2704_v7, %v889_v21  ;;  %v1653_v58 = vadd.f32 %v1652_v9, %v1633_v8 }
 0x4af   :  { %v1819_v18 = vrot.slane %v1818_v13, 4  ;;  %v1673_v25 = vpop.f32.mrf.mxu0  ;;  %v1692_v26 = vpop.f32.mrf.mxu1  ;;  %v891_v27 = vmul.f32 0.5, %v890_v15  ;;  %v1672_v53 = vadd.f32 %v1671_v1, %v1653_v58  ;;  %v1878_v15 = vld [vmem:[%s3904_s7 + $0x110] sm:$0xff] }
 0x4b1   :  { %v1820_v28 = vadd.f32 %v1819_v18, %v1818_v13  ;;  %v892_v22 = vsub.f32 1.5, %v891_v27  ;;  %v1691_v0 = vadd.f32 %v3809_v2, %v1672_v53  ;;  %v1879_v13 = vld [vmem:[%s3904_s7 + $0x118] sm:$0xff]  ;;  %v1778_v53 = vld [vmem:[%s3903_s6 + $0x10] sm:$0xff] }
 0x4b2   :  { %1935 = vmatpush.msrb.mxu2 %v1879_v13 }
 0x4b3   :  { %v893_v30 = vmul.f32 %v2704_v7, %v892_v22  ;;  %v1821_v34 = vrot.slane %v1820_v28, 2  ;;  %v1783_v52 = vmul.f32 %v1777_v63, %v1691_v0 }
 0x4b4   :  { %v1635_v16 = vpop.f32.mrf.mxu2  ;;  %v1654_v41 = vpop.f32.mrf.mxu3  ;;  %1936 = vmatpush.msrb.mxu2 %v1878_v15 }
 0x4b5   :  { %v1655_v44 = vadd.f32 %v1654_v41, %v1635_v16  ;;  %v897_v47 = vsel %vm896_vm3, %v2704_v7, %v893_v30  ;;  %v1822_v49 = vadd.f32 %v1821_v34, %v1820_v28 }
 0x4b6   :  { %v899_v35 = vsel %vm898_vm0, %v879_v43, %v897_v47  ;;  %v1781_v47 = vld [vmem:[%s3903_s6 + $0x28] sm:$0xff] }
 0x4b7   :  { %v1674_v55 = vadd.f32 %v1673_v25, %v1655_v44  ;;  %v1676_v54 = vpop.f32.mrf.mxu0  ;;  %v1695_v56 = vpop.f32.mrf.mxu1  ;;  %1945 = vperm.xlu1 %2671, %v899_v35   ;;  %v1823_v61 = vrot.slane %v1822_v49, 1 }
 0x4b9   :  { %v1693_v62 = vadd.f32 %v1692_v26, %v1674_v55  ;;  %v1824_v42 = vadd.f32 %v1823_v61, %v1822_v49  ;;  %v1877_v26 = vld [vmem:[%s3904_s7 + $0x108] sm:$0xff] }
 0x4ba   :  { %1937 = vmatpush.msrb.mxu2 %v1877_v26 }
 0x4bb   :  { %v1841_v31 = vsel %vm898_vm0, %v1794_v37, %v1824_v42  ;;  %v1786_v33 = vmul.f32 %v1780_v38, %v1693_v62 }
 0x4bc   :  { %v1638_v40 = vpop.f32.mrf.mxu2  ;;  %v1657_v19 = vpop.f32.mrf.mxu3  ;;  %1899 = vmatmul.f32.vlgmr.msra.gmra.mxu2 %v1841_v31 }
 0x4bd   :  { %v1658_v59 = vadd.f32 %v1657_v19, %v1638_v40  ;;  %v1795_v2 = vadd.f32 %v1786_v33, %v1783_v52  ;;  %1938 = vmatpush.msrb.mxu2 %v1876_v11  ;;  %v2676_v11 = vld [vmem:[%s3905_s8] ss:$0 sm:$0xff] }
 0x4bf   :  { %v1678_v39 = vpop.f32.mrf.mxu0  ;;  %v1697_v1 = vpop.f32.mrf.mxu1  ;;  %v1677_v46 = vadd.f32 %v1676_v54, %v1658_v59  ;;  %v1796_v6 = vrot.slane %v1795_v2, 4 }
 0x4c1   :  { %v1696_v20 = vadd.f32 %v1695_v56, %v1677_v46  ;;  %v1797_v51 = vadd.f32 %v1796_v6, %v1795_v2 }
 0x4c3   :  { %v1813_v10 = vmul.f32 %v1777_v63, %v1696_v20  ;;  %v1798_v25 = vrot.slane %v1797_v51, 2 }
 0x4c4   :  { %v1640_v4 = vpop.f32.mrf.mxu2  ;;  %v1659_v5 = vpop.f32.mrf.mxu3 }
 0x4c5   :  { %v1660_v7 = vadd.f32 %v1659_v5, %v1640_v4  ;;  %v1799_v3 = vadd.f32 %v1798_v25, %v1797_v51 }
 0x4c7   :  { %v1679_v21 = vadd.f32 %v1678_v39, %v1660_v7  ;;  %v1747_v24 = vpop.f32.mrf.mxu0  ;;  %v1766_v9 = vpop.f32.mrf.mxu1  ;;  %v1800_v16 = vrot.slane %v1799_v3, 1 }
 0x4c9   :  { %v1698_v8 = vadd.f32 %v1697_v1, %v1679_v21  ;;  %v1801_v35 = vadd.f32 %v1800_v16, %v1799_v3 }
 0x4cb   :  { %v1816_v12 = vmul.f32 %v1780_v38, %v1698_v8 }
 0x4cc   :  { %v1709_v17 = vpop.f32.mrf.mxu2  ;;  %v1728_v29 = vpop.f32.mrf.mxu3 }
 0x4cd   :  { %v1825_v18 = vadd.f32 %v1816_v12, %v1813_v10  ;;  %v1729_v28 = vadd.f32 %v1728_v29, %v1709_v17 }
 0x4cf   :  { %v1826_v27 = vrot.slane %v1825_v18, 4  ;;  %v1749_v22 = vpop.f32.mrf.mxu0  ;;  %v1768_v57 = vpop.f32.mrf.mxu1  ;;  %v1748_v34 = vadd.f32 %v1747_v24, %v1729_v28 }
 0x4d1   :  { %v1827_v23 = vadd.f32 %v1826_v27, %v1825_v18  ;;  %v1767_v45 = vadd.f32 %v1766_v9, %v1748_v34 }
 0x4d3   :  { %v1828_v58 = vrot.slane %v1827_v23, 2  ;;  %v1784_v62 = vmul.f32 %v1778_v53, %v1767_v45 }
 0x4d4   :  { %v1711_v60 = vpop.f32.mrf.mxu2  ;;  %v1730_v30 = vpop.f32.mrf.mxu3 }
 0x4d5   :  { %v1731_v36 = vadd.f32 %v1730_v30, %v1711_v60  ;;  %v1829_v41 = vadd.f32 %v1828_v58, %v1827_v23  ;;  %v1803_v0 = vsel %vm1802_vm4, %v1784_v62, 0.0 }
 0x4d7   :  { %v1750_v43 = vadd.f32 %v1749_v22, %v1731_v36  ;;  %v1830_v44 = vrot.slane %v1829_v41, 1  ;;  %v1752_v54 = vpop.f32.mrf.mxu0  ;;  %v1771_v42 = vpop.f32.mrf.mxu1 }
 0x4d9   :  { %v1769_v49 = vadd.f32 %v1768_v57, %v1750_v43  ;;  %v1831_v50 = vadd.f32 %v1830_v44, %v1829_v41 }
 0x4db   :  { %v1787_v55 = vmul.f32 %v1781_v47, %v1769_v49  ;;  %v1842_v56 = vsel %vm898_vm0, %v1801_v35, %v1831_v50 }
 0x4dc   :  { %v1714_v61 = vpop.f32.mrf.mxu2  ;;  %v1733_v48 = vpop.f32.mrf.mxu3  ;;  %1919 = vmatmul.f32.vlgmr.msra.gmra.mxu3 %v1842_v56 }
 0x4dd   :  { %v1734_v37 = vadd.f32 %v1733_v48, %v1714_v61  ;;  %v1804_v38 = vsel %vm1802_vm4, %v1787_v55, 0.0 }
 0x4de   :  { %v1805_v31 = vadd.f32 %v1804_v38, %v1803_v0 }
 0x4df   :  { %v1753_v14 = vadd.f32 %v1752_v54, %v1734_v37  ;;  %v1754_v33 = vpop.f32.mrf.mxu0  ;;  %v1773_v39 = vpop.f32.mrf.mxu1 }
 0x4e0   :  { %v1806_v52 = vrot.slane %v1805_v31, 4 }
 0x4e1   :  { %v1772_v40 = vadd.f32 %v1771_v42, %v1753_v14 }
 0x4e2   :  { %v1807_v46 = vadd.f32 %v1806_v52, %v1805_v31 }
 0x4e3   :  { %v1814_v1 = vmul.f32 %v1778_v53, %v1772_v40 }
 0x4e4   :  { %v1716_v32 = vpop.f32.mrf.mxu2  ;;  %v1735_v63 = vpop.f32.mrf.mxu3  ;;  %v1808_v7 = vrot.slane %v1807_v46, 2 }
 0x4e5   :  { %v1736_v19 = vadd.f32 %v1735_v63, %v1716_v32  ;;  %v1832_v5 = vsel %vm1802_vm4, %v1814_v1, 0.0 }
 0x4e6   :  { %v1809_v24 = vadd.f32 %v1808_v7, %v1807_v46 }
 0x4e7   :  { %v1755_v59 = vadd.f32 %v1754_v33, %v1736_v19 }
 0x4e8   :  { %v1810_v9 = vrot.slane %v1809_v24, 1 }
 0x4e9   :  { %v1774_v2 = vadd.f32 %v1773_v39, %v1755_v59 }
 0x4ea   :  { %v1811_v13 = vadd.f32 %v1810_v9, %v1809_v24 }
 0x4eb   :  { %v1817_v4 = vmul.f32 %v1781_v47, %v1774_v2 }
 0x4ed   :  { %v1833_v6 = vsel %vm1802_vm4, %v1817_v4, 0.0 }
 0x4ee   :  { %v1834_v20 = vadd.f32 %v1833_v6, %v1832_v5 }
 0x4f0   :  { %v1835_v21 = vrot.slane %v1834_v20, 4 }
 0x4f2   :  { %v1836_v51 = vadd.f32 %v1835_v21, %v1834_v20 }
 0x4f4   :  { %v1837_v8 = vrot.slane %v1836_v51, 2 }
 0x4f6   :  { %v1838_v10 = vadd.f32 %v1837_v8, %v1836_v51 }
 0x4f8   :  { %v1839_v12 = vrot.slane %v1838_v10, 1 }
 0x4fa   :  { %v1840_v15 = vadd.f32 %v1839_v12, %v1838_v10 }
 0x4fc   :  { %v1843_v17 = vsel %vm898_vm0, %v1811_v13, %v1840_v15 }
 0x4fd   :  { %2531 = vmatmul.msk.f32.vlgmr.msrb.gmra.mxu2 %vm1802_vm4, %v1843_v17 }
 0x529   :  { %v1946_v23 = vpop.permute.xlu1 %1945 }
 0x53f   :  { %v1900_v29 = vpop.f32.mrf.mxu2 }
 0x55f   :  { %v1920_v18 = vpop.f32.mrf.mxu3 }
 0x560   :  { %v1921_v25 = vadd.f32 %v1920_v18, %v1900_v29 }
 0x580   :  { %v1940_v26 = vpop.f32.mrf.mxu2 }
 0x581   :  { %v1941_v27 = vadd.f32 %v1940_v26, %v1921_v25 }
 0x583   :  { %v1948_v28 = vmul.f32 %v1946_v23, %v1941_v27 }
 0x585   :  { %v1953_v22 = vadd.f32 %v2676_v11, %v1948_v28 }
 0x587   :  { %v1954_v3 = vsub.f32 0.0, %v1953_v22 }
 0x589   :  { %v1955_v57 = vmul.f32 1.442695, %v1954_v3 }
 0x58b   :  { %2705 = vpow2.f32 %v1955_v57 }
 0x591   :  { %v2706_v58 = vpop.eup %2705 }
 0x592   :  { %v1957_v60 = vadd.f32 1.0, %v2706_v58 }
 0x594   :  { %2707 = vrcp.f32 %v1957_v60 }
 0x59a   :  { %v2708_v30 = vpop.eup %2707 }
 0x59b   :  { %1960 = vst.msk [vmem:[#allocation2] sm:$0x3] %vm1959_vm5, %v2708_v30 }
 0x59c   :  { %1971 = dma.vmem_to_hbm [thread:$0]  %s1967_s12, 32, %s1969_s4, [#allocation3]  }
 0x59d   :  { %2733 = dma.done.wait [#allocation3], 32  }
 0x59e   :  { %2734 = vsyncadd [#allocation3], 4294967264 }
 0x59f   :  { %1976 = vsyncpa [#allocation3], 1 }

</bundles_post_ra>
